<compile_context>
chip_gen: v7x
topology: tpu7x:2x2x1
jax: 0.10.0
libtpu: 0.0.40
codegen_flags: <defaults>
</compile_context>

<pallas_src>
import numpy as np
import jax
import jax.numpy as jnp
from jax.experimental import pallas as pl
from jax.experimental.pallas import tpu as pltpu

LANE = 128
VMEM_LIMIT = 48 * 1024 * 1024   # sized against v7x's 64 MiB/TC physical VMEM


def _round_up(x, m):
    return (x + m - 1) // m * m


# ----------------------------------------------------------------------------
# Host-side constant bilinear (align_corners=True) resize matrices.
# ----------------------------------------------------------------------------
def _interp_matrix_align_corners(s_out, s_in):
    A = np.zeros((s_out, s_in), dtype=np.float64)
    if s_out == 1 or s_in == 1:
        A[:, 0] = 1.0
        return A
    for i in range(s_out):
        src = i * (s_in - 1) / (s_out - 1)
        i0 = min(int(np.floor(src)), s_in - 1)
        i1 = min(i0 + 1, s_in - 1)
        f = src - i0
        A[i, i0] += 1.0 - f
        A[i, i1] += f
    return A


def _resize_matrix(s_in, s_target):
    # nn.Upsample(scale_factor=2, bilinear, align_corners=True), then (if needed)
    # F.interpolate to the skip size -- both linear maps, composed on the host.
    s_up = int(np.floor(s_in * 2))
    A = _interp_matrix_align_corners(s_up, s_in)
    if s_up != s_target:
        A = _interp_matrix_align_corners(s_target, s_up) @ A
    return A


def _pick_band(H, W, Cin, Cout):
    """Largest row-band height TH (divisor of H, 8-aligned or ==H) within a
    conservative VMEM working-set budget (band x2 slots + shifted copies + acc
    + double-buffered y block)."""
    budget = 20 * 1024 * 1024
    best = 1
    for th in range(1, H + 1):
        if H % th:
            continue
        if not (th % 8 == 0 or th == H):
            continue
        need = (2 * (th + 2) * W * Cin * 2          # 2-slot bf16 halo band
                + 3 * (th + 2) * W * Cin * 2        # 3 column-shifted copies
                + th * W * Cout * 4                 # local f32 accumulator
                + 2 * 2 * th * W * Cout * 2)        # double-buffered bf16 y block
        if need <= budget and th * W <= 8192:
            best = th
    return best


# ----------------------------------------------------------------------------
# Kernel 1: separable bilinear upsample + channel concat + lane pad.
#   x2d    : (N, h, w*Cx) f32   (channel-interleaved low-res input)
#   skip_r : (N*H, W, Cs) f32
#   out    : (N*H, W, Cin_p) bf16   (conv-1 input, lane-dense, no spatial pad)
# ----------------------------------------------------------------------------
def upsample_concat(x2d, skip_r, A_h, A_w, *, N, h, w, Cx, Cs, H, W, Cin_p, TH):
    n_hb = H // TH

    def kernel(x_ref, s_ref, ah_ref, aw_ref, o_ref):
        # height resize for this band: (TH, h) @ (h, w*Cx)
        t1 = jnp.dot(ah_ref[...], x_ref[0], preferred_element_type=jnp.float32)
        # unflatten lanes (w*Cx) -> (w, Cx) with explicit slices (no exotic reshape)
        cols = [t1[:, j * Cx:(j + 1) * Cx] for j in range(w)]
        t1_3d = jnp.stack(cols, axis=1)                                # (TH, w, Cx)
        # width resize per output row: (W, w) @ (w, Cx)
        rows = [jnp.dot(aw_ref[...], t1_3d[r], preferred_element_type=jnp.float32)
                for r in range(TH)]
        xup = jnp.stack(rows, axis=0)                                  # (TH, W, Cx)
        parts = [xup, s_ref[...]]
        if Cin_p > Cx + Cs:
            parts.append(jnp.zeros((TH, W, Cin_p - Cx - Cs), jnp.float32))
        # single lane-dense store (x channels at 0..Cx, skip at Cx..Cx+Cs, zero pad)
        o_ref[...] = jnp.concatenate(parts, axis=-1).astype(o_ref.dtype)

    return pl.pallas_call(
        kernel,
        out_shape=jax.ShapeDtypeStruct((N * H, W, Cin_p), jnp.bfloat16),
        grid=(N, n_hb),
        in_specs=[
            pl.BlockSpec((1, h, w * Cx), lambda n, b: (n, 0, 0)),
            pl.BlockSpec((TH, W, Cs), lambda n, b: (n * n_hb + b, 0, 0)),
            pl.BlockSpec((TH, h), lambda n, b: (b, 0)),
            pl.BlockSpec((W, w), lambda n, b: (0, 0)),
        ],
        out_specs=pl.BlockSpec((TH, W, Cin_p), lambda n, b: (n * n_hb + b, 0, 0)),
        compiler_params=pltpu.CompilerParams(
            dimension_semantics=("parallel", "parallel"),
            vmem_limit_bytes=VMEM_LIMIT),
    )(x2d, skip_r, A_h, A_w)


# ----------------------------------------------------------------------------
# Kernel 2: 3x3 conv (+ bias) over (batch, row-band) with
#   * manually double-buffered halo-band DMA (input stays in HBM),
#   * optional fused BatchNorm+ReLU applied to the input band (layer 2),
#   * local f32 accumulation of the 9 taps, bf16 y output,
#   * per-band (sum, sum^2) f32 partials for the two-pass BatchNorm.
# ----------------------------------------------------------------------------
def conv3x3_bn_stats(x_in, w_hwio, bias, scale, shift, *,
                     N, H, W, Cin, Cout, TH, fuse_bn_relu):
    n_hb = H // TH

    def kernel(x_hbm, w_ref, b_ref, sc_ref, sh_ref, y_ref, st_ref, band, sem):
        n = pl.program_id(0)
        hb = pl.program_id(1)

        def start_fetch(bb, slot):
            base = n * H + bb * TH
            pltpu.make_async_copy(x_hbm.at[pl.ds(base, TH)],
                                  band.at[slot, pl.ds(1, TH)],
                                  sem.at[slot, 0]).start()

            @pl.when(bb > 0)                     # top halo row
            def _():
                pltpu.make_async_copy(x_hbm.at[pl.ds(base - 1, 1)],
                                      band.at[slot, pl.ds(0, 1)],
                                      sem.at[slot, 1]).start()

            @pl.when(bb < n_hb - 1)              # bottom halo row
            def _():
                pltpu.make_async_copy(x_hbm.at[pl.ds(base + TH, 1)],
                                      band.at[slot, pl.ds(TH + 1, 1)],
                                      sem.at[slot, 2]).start()

        def wait_fetch(bb, slot):
            pltpu.make_async_copy(x_hbm.at[pl.ds(0, TH)],
                                  band.at[slot, pl.ds(1, TH)],
                                  sem.at[slot, 0]).wait()

            @pl.when(bb > 0)
            def _():
                pltpu.make_async_copy(x_hbm.at[pl.ds(0, 1)],
                                      band.at[slot, pl.ds(0, 1)],
                                      sem.at[slot, 1]).wait()

            @pl.when(bb < n_hb - 1)
            def _():
                pltpu.make_async_copy(x_hbm.at[pl.ds(0, 1)],
                                      band.at[slot, pl.ds(TH + 1, 1)],
                                      sem.at[slot, 2]).wait()

        slot = hb % 2

        @pl.when(hb == 0)                        # prime the pipeline per image
        def _():
            start_fetch(hb, slot)

        wait_fetch(hb, slot)

        @pl.when(hb + 1 < n_hb)                  # prefetch next band of this image
        def _():
            start_fetch(hb + 1, 1 - slot)

        yb = band[slot]                          # (TH+2, W, Cin) bf16
        if fuse_bn_relu:                         # previous layer's BN + ReLU
            zf = jnp.maximum(yb.astype(jnp.float32) * sc_ref[...].reshape(1, 1, Cin)
                             + sh_ref[...].reshape(1, 1, Cin), 0.0)
            zb = zf.astype(jnp.bfloat16)
        else:
            zb = yb
        # zero the out-of-image halo rows (in z-space: padding happens after BN/ReLU)
        row = jax.lax.broadcasted_iota(jnp.int32, (TH + 2, 1, 1), 0)
        valid = ((row > 0) | (hb > 0)) & ((row < TH + 1) | (hb < n_hb - 1))
        zb = jnp.where(valid, zb, jnp.zeros_like(zb))

        # three column-shifted operands built once per band; taps are free views
        zero_col = jnp.zeros((TH + 2, 1, Cin), zb.dtype)
        z_shift = (
            jnp.concatenate([zero_col, zb[:, :W - 1, :]], axis=1),   # kx = 0
            zb,                                                      # kx = 1
            jnp.concatenate([zb[:, 1:, :], zero_col], axis=1),       # kx = 2
        )

        acc = None                               # local f32 accumulation (no VMEM RMW)
        for ky in range(3):
            for kx in range(3):
                patch = z_shift[kx][ky:ky + TH].reshape(TH * W, Cin)
                p = jnp.dot(patch, w_ref[ky, kx],
                            preferred_element_type=jnp.float32)
                acc = p if acc is None else acc + p
        acc = acc + b_ref[...]

        st_ref[0, 0:1, :] = jnp.sum(acc, axis=0, keepdims=True)
        st_ref[0, 1:2, :] = jnp.sum(acc * acc, axis=0, keepdims=True)
        y_ref[...] = acc.reshape(TH, W, Cout).astype(y_ref.dtype)

    return pl.pallas_call(
        kernel,
        out_shape=(jax.ShapeDtypeStruct((N * H, W, Cout), jnp.bfloat16),
                   jax.ShapeDtypeStruct((N * n_hb, 2, Cout), jnp.float32)),
        grid=(N, n_hb),
        in_specs=[
            pl.BlockSpec(memory_space=pl.ANY),                       # stays in HBM
            pl.BlockSpec((3, 3, Cin, Cout), lambda n, b: (0, 0, 0, 0)),
            pl.BlockSpec((1, Cout), lambda n, b: (0, 0)),
            pl.BlockSpec((1, Cin), lambda n, b: (0, 0)),
            pl.BlockSpec((1, Cin), lambda n, b: (0, 0)),
        ],
        out_specs=(pl.BlockSpec((TH, W, Cout), lambda n, b: (n * n_hb + b, 0, 0)),
                   pl.BlockSpec((1, 2, Cout), lambda n, b: (n * n_hb + b, 0, 0))),
        scratch_shapes=[pltpu.VMEM((2, TH + 2, W, Cin), jnp.bfloat16),
                        pltpu.SemaphoreType.DMA((2, 3))],
        compiler_params=pltpu.CompilerParams(
            dimension_semantics=("parallel", "arbitrary"),
            vmem_limit_bytes=VMEM_LIMIT),
    )(x_in, w_hwio, bias, scale, shift)


# ----------------------------------------------------------------------------
# Kernel 3: final BN + ReLU, row-band tiled, f32 NHWC output.
# ----------------------------------------------------------------------------
def bn_relu_out(y, scale, shift, *, N, H, W, Cout, TH):
    n_hb = H // TH

    def kernel(y_ref, sc_ref, sh_ref, o_ref):
        z = jnp.maximum(y_ref[...].astype(jnp.float32) * sc_ref[...].reshape(1, 1, Cout)
                        + sh_ref[...].reshape(1, 1, Cout), 0.0)
        o_ref[0] = z

    return pl.pallas_call(
        kernel,
        out_shape=jax.ShapeDtypeStruct((N, H, W, Cout), jnp.float32),
        grid=(N, n_hb),
        in_specs=[pl.BlockSpec((TH, W, Cout), lambda n, b: (n * n_hb + b, 0, 0)),
                  pl.BlockSpec((1, Cout), lambda n, b: (0, 0)),
                  pl.BlockSpec((1, Cout), lambda n, b: (0, 0))],
        out_specs=pl.BlockSpec((1, TH, W, Cout), lambda n, b: (n, b, 0, 0)),
        compiler_params=pltpu.CompilerParams(
            dimension_semantics=("parallel", "parallel"),
            vmem_limit_bytes=VMEM_LIMIT),
    )(y, scale, shift)


# ----------------------------------------------------------------------------
# Small wrapper glue (O(C) only).
# ----------------------------------------------------------------------------
def _bn_scale_shift(st, gamma_pad, beta_pad, count, eps=1e-5):
    s = jnp.sum(st[:, 0, :], axis=0)
    ss = jnp.sum(st[:, 1, :], axis=0)
    mu = s / count
    var = jnp.maximum(ss / count - mu * mu, 0.0)          # biased (train-mode) variance
    scale = gamma_pad * jax.lax.rsqrt(var + eps)
    shift = beta_pad - mu * scale
    return scale.reshape(1, -1), shift.reshape(1, -1)


def _pad_vec(v, Cp):
    return jnp.zeros((Cp,), jnp.float32).at[:v.shape[0]].set(v.astype(jnp.float32))


def _prep_weight(w_oihw, Cip, Cop):
    co, ci, kh, kw = w_oihw.shape
    w_hwio = jnp.transpose(w_oihw, (2, 3, 1, 0)).astype(jnp.float32)
    w_pad = jnp.zeros((kh, kw, Cip, Cop), jnp.float32).at[:, :, :ci, :co].set(w_hwio)
    return w_pad.astype(jnp.bfloat16)


# ----------------------------------------------------------------------------
# UpBlock forward: NCHW in / NCHW out, matching the PyTorch module (train mode).
# ----------------------------------------------------------------------------
def upblock_forward(x, skip, params, *, eps=1e-5):
    N, Cx, h, w = x.shape
    _, Cs, H, W = skip.shape
    out_ch = params["w1"].shape[0]
    in_ch = Cx + Cs
    Cin_p = _round_up(in_ch, LANE)
    Cout_p = _round_up(out_ch, LANE)
    count = N * H * W
    TH = _pick_band(H, W, max(Cin_p, Cout_p), Cout_p)

    A_h = jnp.asarray(_resize_matrix(h, H), jnp.float32)           # (H, h)
    A_w = jnp.asarray(_resize_matrix(w, W), jnp.float32)           # (W, w)

    # tiny layout glue on the raw (small / un-fused) inputs only
    x2d = jnp.transpose(x, (0, 2, 3, 1)).reshape(N, h, w * Cx)
    skip_r = jnp.transpose(skip, (0, 2, 3, 1)).reshape(N * H, W, Cs)

    # K1: upsample + concat -> conv-1 input.
    z0 = upsample_concat(x2d, skip_r, A_h, A_w, N=N, h=h, w=w, Cx=Cx, Cs=Cs,
                         H=H, W=W, Cin_p=Cin_p, TH=TH)

    # Layer 1: conv + bias (+ BN partials).
    w1 = _prep_weight(params["w1"], Cin_p, Cout_p)
    b1 = _pad_vec(params["b1"], Cout_p).reshape(1, -1)
    one_in = jnp.ones((1, Cin_p), jnp.float32)
    zero_in = jnp.zeros((1, Cin_p), jnp.float32)
    y1, st1 = conv3x3_bn_stats(z0, w1, b1, one_in, zero_in,
                               N=N, H=H, W=W, Cin=Cin_p, Cout=Cout_p, TH=TH,
                               fuse_bn_relu=False)
    sc1, sh1 = _bn_scale_shift(st1, _pad_vec(params["g1"], Cout_p),
                               _pad_vec(params["be1"], Cout_p), count, eps)

    # Layer 2: BN1+ReLU fused into the conv-2 input path (no HBM round trip).
    w2 = _prep_weight(params["w2"], Cout_p, Cout_p)
    b2 = _pad_vec(params["b2"], Cout_p).reshape(1, -1)
    y2, st2 = conv3x3_bn_stats(y1, w2, b2, sc1, sh1,
                               N=N, H=H, W=W, Cin=Cout_p, Cout=Cout_p, TH=TH,
                               fuse_bn_relu=True)
    sc2, sh2 = _bn_scale_shift(st2, _pad_vec(params["g2"], Cout_p),
                               _pad_vec(params["be2"], Cout_p), count, eps)

    out_nhwc = bn_relu_out(y2, sc2, sh2, N=N, H=H, W=W, Cout=Cout_p, TH=TH)
    return jnp.transpose(out_nhwc[..., :out_ch], (0, 3, 1, 2))


# ----------------------------------------------------------------------------
# Pure-JAX reference.
# ----------------------------------------------------------------------------
def upblock_reference(x, skip, params, eps=1e-5):
    _, _, h, w = x.shape
    _, _, H, W = skip.shape
    A_h = jnp.asarray(_resize_matrix(h, H), jnp.float32)
    A_w = jnp.asarray(_resize_matrix(w, W), jnp.float32)
    x_up = jnp.einsum("Hh,nchw,Ww->ncHW", A_h, x, A_w)
    z = jnp.concatenate([x_up, skip], axis=1)

    def cbr(z, wgt, b, g, be):
        y = jax.lax.conv_general_dilated(
            z, wgt, (1, 1), "SAME",
            dimension_numbers=("NCHW", "OIHW", "NCHW")) + b.reshape(1, -1, 1, 1)
        mu = jnp.mean(y, axis=(0, 2, 3), keepdims=True)
        var = jnp.mean(jnp.square(y - mu), axis=(0, 2, 3), keepdims=True)
        y = (y - mu) * jax.lax.rsqrt(var + eps) * g.reshape(1, -1, 1, 1) + be.reshape(1, -1, 1, 1)
        return jnp.maximum(y, 0.0)

    z = cbr(z, params["w1"], params["b1"], params["g1"], params["be1"])
    z = cbr(z, params["w2"], params["b2"], params["g2"], params["be2"])
    return z


def init_params(key, in_ch, out_ch):
    ks = jax.random.split(key, 8)
    f32 = jnp.float32
    return dict(
        w1=0.1 * jax.random.normal(ks[0], (out_ch, in_ch, 3, 3), f32),
        b1=0.1 * jax.random.normal(ks[1], (out_ch,), f32),
        g1=1.0 + 0.1 * jax.random.normal(ks[2], (out_ch,), f32),
        be1=0.1 * jax.random.normal(ks[3], (out_ch,), f32),
        w2=0.1 * jax.random.normal(ks[4], (out_ch, out_ch, 3, 3), f32),
        b2=0.1 * jax.random.normal(ks[5], (out_ch,), f32),
        g2=1.0 + 0.1 * jax.random.normal(ks[6], (out_ch,), f32),
        be2=0.1 * jax.random.normal(ks[7], (out_ch,), f32),
    )


if __name__ == "__main__":
    key = jax.random.PRNGKey(0)
    kx, ks, kp = jax.random.split(key, 3)

    # x: (N, Cx, h, w) low-res features; skip: (N, Cs, 2h, 2w) encoder features.
    N, Cx, h, w = 2, 4, 8, 8
    Cs, H, W = 4, 16, 16
    in_ch, out_ch = Cx + Cs, 4            # UpBlock(in_ch=8, out_ch=4)

    x = jax.random.normal(kx, (N, Cx, h, w), jnp.float32)
    skip = jax.random.normal(ks, (N, Cs, H, W), jnp.float32)
    params = init_params(kp, in_ch, out_ch)

    out = jax.block_until_ready(upblock_forward(x, skip, params))
    assert out.shape == (N, out_ch, H, W)

    ref = jax.block_until_ready(upblock_reference(x, skip, params))
    np.testing.assert_allclose(np.asarray(out), np.asarray(ref), atol=5e-2, rtol=5e-2)

    print("KERNEL_OK")
</pallas_src>

<mosaic_0001>
module attributes {stable_mosaic.version = 11 : i64} {
  func.func @kernel(%arg0: i32, %arg1: i32, %arg2: memref<1x8x32xf32, #tpu.memory_space<vmem>>, %arg3: memref<16x16x4xf32, #tpu.memory_space<vmem>>, %arg4: memref<16x8xf32, #tpu.memory_space<vmem>>, %arg5: memref<16x8xf32, #tpu.memory_space<vmem>>, %arg6: memref<16x16x128xbf16, #tpu.memory_space<vmem>>) attributes {dimension_semantics = [#tpu.dimension_semantics<parallel>, #tpu.dimension_semantics<parallel>], iteration_bounds = array<i64: 2, 1>, scalar_prefetch = 0 : i64, scratch_operands = 0 : i64, tpu.core_type = #tpu.core_type<tc>, window_params = [{transform_indices = @transform_0, window_bounds = array<i64: 1, 8, 32>}, {transform_indices = @transform_1, window_bounds = array<i64: 16, 16, 4>}, {transform_indices = @transform_2, window_bounds = array<i64: 16, 8>}, {pipeline_mode = #tpu.pipeline_mode<synchronous>, transform_indices = @transform_3, window_bounds = array<i64: 16, 8>}, {transform_indices = @transform_4, window_bounds = array<i64: 16, 16, 128>}]} {
    %c0 = arith.constant 0 : index
    %c0_0 = arith.constant 0 : index
    %0 = vector.load %arg4[%c0, %c0_0] : memref<16x8xf32, #tpu.memory_space<vmem>>, vector<16x8xf32>
    %c0_1 = arith.constant 0 : index
    %c0_2 = arith.constant 0 : index
    %c0_3 = arith.constant 0 : index
    %1 = vector.load %arg2[%c0_1, %c0_2, %c0_3] : memref<1x8x32xf32, #tpu.memory_space<vmem>>, vector<1x8x32xf32>
    %2 = vector.shape_cast %1 : vector<1x8x32xf32> to vector<8x32xf32>
    %cst = arith.constant dense<0.000000e+00> : vector<16x32xf32>
    %3 = tpu.matmul %0, %2, %cst {dimension_numbers = #tpu.dot_dimension_numbers<[1], [0], [0], [1], [0, 0, 1, 1], [], []>} : vector<16x8xf32>, vector<8x32xf32>, vector<16x32xf32> -> vector<16x32xf32>
    %4 = vector.extract_strided_slice %3 {offsets = [0, 0], sizes = [16, 4], strides = [1, 1]} : vector<16x32xf32> to vector<16x4xf32>
    %5 = vector.extract_strided_slice %3 {offsets = [0, 4], sizes = [16, 4], strides = [1, 1]} : vector<16x32xf32> to vector<16x4xf32>
    %6 = vector.extract_strided_slice %3 {offsets = [0, 8], sizes = [16, 4], strides = [1, 1]} : vector<16x32xf32> to vector<16x4xf32>
    %7 = vector.extract_strided_slice %3 {offsets = [0, 12], sizes = [16, 4], strides = [1, 1]} : vector<16x32xf32> to vector<16x4xf32>
    %8 = vector.extract_strided_slice %3 {offsets = [0, 16], sizes = [16, 4], strides = [1, 1]} : vector<16x32xf32> to vector<16x4xf32>
    %9 = vector.extract_strided_slice %3 {offsets = [0, 20], sizes = [16, 4], strides = [1, 1]} : vector<16x32xf32> to vector<16x4xf32>
    %10 = vector.extract_strided_slice %3 {offsets = [0, 24], sizes = [16, 4], strides = [1, 1]} : vector<16x32xf32> to vector<16x4xf32>
    %11 = vector.extract_strided_slice %3 {offsets = [0, 28], sizes = [16, 4], strides = [1, 1]} : vector<16x32xf32> to vector<16x4xf32>
    %12 = vector.shape_cast %4 : vector<16x4xf32> to vector<16x1x4xf32>
    %13 = vector.shape_cast %5 : vector<16x4xf32> to vector<16x1x4xf32>
    %14 = vector.shape_cast %6 : vector<16x4xf32> to vector<16x1x4xf32>
    %15 = vector.shape_cast %7 : vector<16x4xf32> to vector<16x1x4xf32>
    %16 = vector.shape_cast %8 : vector<16x4xf32> to vector<16x1x4xf32>
    %17 = vector.shape_cast %9 : vector<16x4xf32> to vector<16x1x4xf32>
    %18 = vector.shape_cast %10 : vector<16x4xf32> to vector<16x1x4xf32>
    %19 = vector.shape_cast %11 : vector<16x4xf32> to vector<16x1x4xf32>
    %20 = tpu.concatenate %12, %13, %14, %15, %16, %17, %18, %19 in 1 : vector<16x1x4xf32>, vector<16x1x4xf32>, vector<16x1x4xf32>, vector<16x1x4xf32>, vector<16x1x4xf32>, vector<16x1x4xf32>, vector<16x1x4xf32>, vector<16x1x4xf32> -> vector<16x8x4xf32>
    %c0_4 = arith.constant 0 : index
    %c0_5 = arith.constant 0 : index
    %21 = vector.load %arg5[%c0_4, %c0_5] : memref<16x8xf32, #tpu.memory_space<vmem>>, vector<16x8xf32>
    %22 = vector.extract_strided_slice %20 {offsets = [0, 0, 0], sizes = [1, 8, 4], strides = [1, 1, 1]} : vector<16x8x4xf32> to vector<1x8x4xf32>
    %23 = vector.shape_cast %22 : vector<1x8x4xf32> to vector<8x4xf32>
    %cst_6 = arith.constant dense<0.000000e+00> : vector<16x4xf32>
    %24 = tpu.matmul %21, %23, %cst_6 {dimension_numbers = #tpu.dot_dimension_numbers<[1], [0], [0], [1], [0, 0, 1, 1], [], []>} : vector<16x8xf32>, vector<8x4xf32>, vector<16x4xf32> -> vector<16x4xf32>
    %c0_7 = arith.constant 0 : index
    %c0_8 = arith.constant 0 : index
    %25 = vector.load %arg5[%c0_7, %c0_8] : memref<16x8xf32, #tpu.memory_space<vmem>>, vector<16x8xf32>
    %26 = vector.extract_strided_slice %20 {offsets = [1, 0, 0], sizes = [1, 8, 4], strides = [1, 1, 1]} : vector<16x8x4xf32> to vector<1x8x4xf32>
    %27 = vector.shape_cast %26 : vector<1x8x4xf32> to vector<8x4xf32>
    %cst_9 = arith.constant dense<0.000000e+00> : vector<16x4xf32>
    %28 = tpu.matmul %25, %27, %cst_9 {dimension_numbers = #tpu.dot_dimension_numbers<[1], [0], [0], [1], [0, 0, 1, 1], [], []>} : vector<16x8xf32>, vector<8x4xf32>, vector<16x4xf32> -> vector<16x4xf32>
    %c0_10 = arith.constant 0 : index
    %c0_11 = arith.constant 0 : index
    %29 = vector.load %arg5[%c0_10, %c0_11] : memref<16x8xf32, #tpu.memory_space<vmem>>, vector<16x8xf32>
    %30 = vector.extract_strided_slice %20 {offsets = [2, 0, 0], sizes = [1, 8, 4], strides = [1, 1, 1]} : vector<16x8x4xf32> to vector<1x8x4xf32>
    %31 = vector.shape_cast %30 : vector<1x8x4xf32> to vector<8x4xf32>
    %cst_12 = arith.constant dense<0.000000e+00> : vector<16x4xf32>
    %32 = tpu.matmul %29, %31, %cst_12 {dimension_numbers = #tpu.dot_dimension_numbers<[1], [0], [0], [1], [0, 0, 1, 1], [], []>} : vector<16x8xf32>, vector<8x4xf32>, vector<16x4xf32> -> vector<16x4xf32>
    %c0_13 = arith.constant 0 : index
    %c0_14 = arith.constant 0 : index
    %33 = vector.load %arg5[%c0_13, %c0_14] : memref<16x8xf32, #tpu.memory_space<vmem>>, vector<16x8xf32>
    %34 = vector.extract_strided_slice %20 {offsets = [3, 0, 0], sizes = [1, 8, 4], strides = [1, 1, 1]} : vector<16x8x4xf32> to vector<1x8x4xf32>
    %35 = vector.shape_cast %34 : vector<1x8x4xf32> to vector<8x4xf32>
    %cst_15 = arith.constant dense<0.000000e+00> : vector<16x4xf32>
    %36 = tpu.matmul %33, %35, %cst_15 {dimension_numbers = #tpu.dot_dimension_numbers<[1], [0], [0], [1], [0, 0, 1, 1], [], []>} : vector<16x8xf32>, vector<8x4xf32>, vector<16x4xf32> -> vector<16x4xf32>
    %c0_16 = arith.constant 0 : index
    %c0_17 = arith.constant 0 : index
    %37 = vector.load %arg5[%c0_16, %c0_17] : memref<16x8xf32, #tpu.memory_space<vmem>>, vector<16x8xf32>
    %38 = vector.extract_strided_slice %20 {offsets = [4, 0, 0], sizes = [1, 8, 4], strides = [1, 1, 1]} : vector<16x8x4xf32> to vector<1x8x4xf32>
    %39 = vector.shape_cast %38 : vector<1x8x4xf32> to vector<8x4xf32>
    %cst_18 = arith.constant dense<0.000000e+00> : vector<16x4xf32>
    %40 = tpu.matmul %37, %39, %cst_18 {dimension_numbers = #tpu.dot_dimension_numbers<[1], [0], [0], [1], [0, 0, 1, 1], [], []>} : vector<16x8xf32>, vector<8x4xf32>, vector<16x4xf32> -> vector<16x4xf32>
    %c0_19 = arith.constant 0 : index
    %c0_20 = arith.constant 0 : index
    %41 = vector.load %arg5[%c0_19, %c0_20] : memref<16x8xf32, #tpu.memory_space<vmem>>, vector<16x8xf32>
    %42 = vector.extract_strided_slice %20 {offsets = [5, 0, 0], sizes = [1, 8, 4], strides = [1, 1, 1]} : vector<16x8x4xf32> to vector<1x8x4xf32>
    %43 = vector.shape_cast %42 : vector<1x8x4xf32> to vector<8x4xf32>
    %cst_21 = arith.constant dense<0.000000e+00> : vector<16x4xf32>
    %44 = tpu.matmul %41, %43, %cst_21 {dimension_numbers = #tpu.dot_dimension_numbers<[1], [0], [0], [1], [0, 0, 1, 1], [], []>} : vector<16x8xf32>, vector<8x4xf32>, vector<16x4xf32> -> vector<16x4xf32>
    %c0_22 = arith.constant 0 : index
    %c0_23 = arith.constant 0 : index
    %45 = vector.load %arg5[%c0_22, %c0_23] : memref<16x8xf32, #tpu.memory_space<vmem>>, vector<16x8xf32>
    %46 = vector.extract_strided_slice %20 {offsets = [6, 0, 0], sizes = [1, 8, 4], strides = [1, 1, 1]} : vector<16x8x4xf32> to vector<1x8x4xf32>
    %47 = vector.shape_cast %46 : vector<1x8x4xf32> to vector<8x4xf32>
    %cst_24 = arith.constant dense<0.000000e+00> : vector<16x4xf32>
    %48 = tpu.matmul %45, %47, %cst_24 {dimension_numbers = #tpu.dot_dimension_numbers<[1], [0], [0], [1], [0, 0, 1, 1], [], []>} : vector<16x8xf32>, vector<8x4xf32>, vector<16x4xf32> -> vector<16x4xf32>
    %c0_25 = arith.constant 0 : index
    %c0_26 = arith.constant 0 : index
    %49 = vector.load %arg5[%c0_25, %c0_26] : memref<16x8xf32, #tpu.memory_space<vmem>>, vector<16x8xf32>
    %50 = vector.extract_strided_slice %20 {offsets = [7, 0, 0], sizes = [1, 8, 4], strides = [1, 1, 1]} : vector<16x8x4xf32> to vector<1x8x4xf32>
    %51 = vector.shape_cast %50 : vector<1x8x4xf32> to vector<8x4xf32>
    %cst_27 = arith.constant dense<0.000000e+00> : vector<16x4xf32>
    %52 = tpu.matmul %49, %51, %cst_27 {dimension_numbers = #tpu.dot_dimension_numbers<[1], [0], [0], [1], [0, 0, 1, 1], [], []>} : vector<16x8xf32>, vector<8x4xf32>, vector<16x4xf32> -> vector<16x4xf32>
    %c0_28 = arith.constant 0 : index
    %c0_29 = arith.constant 0 : index
    %53 = vector.load %arg5[%c0_28, %c0_29] : memref<16x8xf32, #tpu.memory_space<vmem>>, vector<16x8xf32>
    %54 = vector.extract_strided_slice %20 {offsets = [8, 0, 0], sizes = [1, 8, 4], strides = [1, 1, 1]} : vector<16x8x4xf32> to vector<1x8x4xf32>
    %55 = vector.shape_cast %54 : vector<1x8x4xf32> to vector<8x4xf32>
    %cst_30 = arith.constant dense<0.000000e+00> : vector<16x4xf32>
    %56 = tpu.matmul %53, %55, %cst_30 {dimension_numbers = #tpu.dot_dimension_numbers<[1], [0], [0], [1], [0, 0, 1, 1], [], []>} : vector<16x8xf32>, vector<8x4xf32>, vector<16x4xf32> -> vector<16x4xf32>
    %c0_31 = arith.constant 0 : index
    %c0_32 = arith.constant 0 : index
    %57 = vector.load %arg5[%c0_31, %c0_32] : memref<16x8xf32, #tpu.memory_space<vmem>>, vector<16x8xf32>
    %58 = vector.extract_strided_slice %20 {offsets = [9, 0, 0], sizes = [1, 8, 4], strides = [1, 1, 1]} : vector<16x8x4xf32> to vector<1x8x4xf32>
    %59 = vector.shape_cast %58 : vector<1x8x4xf32> to vector<8x4xf32>
    %cst_33 = arith.constant dense<0.000000e+00> : vector<16x4xf32>
    %60 = tpu.matmul %57, %59, %cst_33 {dimension_numbers = #tpu.dot_dimension_numbers<[1], [0], [0], [1], [0, 0, 1, 1], [], []>} : vector<16x8xf32>, vector<8x4xf32>, vector<16x4xf32> -> vector<16x4xf32>
    %c0_34 = arith.constant 0 : index
    %c0_35 = arith.constant 0 : index
    %61 = vector.load %arg5[%c0_34, %c0_35] : memref<16x8xf32, #tpu.memory_space<vmem>>, vector<16x8xf32>
    %62 = vector.extract_strided_slice %20 {offsets = [10, 0, 0], sizes = [1, 8, 4], strides = [1, 1, 1]} : vector<16x8x4xf32> to vector<1x8x4xf32>
    %63 = vector.shape_cast %62 : vector<1x8x4xf32> to vector<8x4xf32>
    %cst_36 = arith.constant dense<0.000000e+00> : vector<16x4xf32>
    %64 = tpu.matmul %61, %63, %cst_36 {dimension_numbers = #tpu.dot_dimension_numbers<[1], [0], [0], [1], [0, 0, 1, 1], [], []>} : vector<16x8xf32>, vector<8x4xf32>, vector<16x4xf32> -> vector<16x4xf32>
    %c0_37 = arith.constant 0 : index
    %c0_38 = arith.constant 0 : index
    %65 = vector.load %arg5[%c0_37, %c0_38] : memref<16x8xf32, #tpu.memory_space<vmem>>, vector<16x8xf32>
    %66 = vector.extract_strided_slice %20 {offsets = [11, 0, 0], sizes = [1, 8, 4], strides = [1, 1, 1]} : vector<16x8x4xf32> to vector<1x8x4xf32>
    %67 = vector.shape_cast %66 : vector<1x8x4xf32> to vector<8x4xf32>
    %cst_39 = arith.constant dense<0.000000e+00> : vector<16x4xf32>
    %68 = tpu.matmul %65, %67, %cst_39 {dimension_numbers = #tpu.dot_dimension_numbers<[1], [0], [0], [1], [0, 0, 1, 1], [], []>} : vector<16x8xf32>, vector<8x4xf32>, vector<16x4xf32> -> vector<16x4xf32>
    %c0_40 = arith.constant 0 : index
    %c0_41 = arith.constant 0 : index
    %69 = vector.load %arg5[%c0_40, %c0_41] : memref<16x8xf32, #tpu.memory_space<vmem>>, vector<16x8xf32>
    %70 = vector.extract_strided_slice %20 {offsets = [12, 0, 0], sizes = [1, 8, 4], strides = [1, 1, 1]} : vector<16x8x4xf32> to vector<1x8x4xf32>
    %71 = vector.shape_cast %70 : vector<1x8x4xf32> to vector<8x4xf32>
    %cst_42 = arith.constant dense<0.000000e+00> : vector<16x4xf32>
    %72 = tpu.matmul %69, %71, %cst_42 {dimension_numbers = #tpu.dot_dimension_numbers<[1], [0], [0], [1], [0, 0, 1, 1], [], []>} : vector<16x8xf32>, vector<8x4xf32>, vector<16x4xf32> -> vector<16x4xf32>
    %c0_43 = arith.constant 0 : index
    %c0_44 = arith.constant 0 : index
    %73 = vector.load %arg5[%c0_43, %c0_44] : memref<16x8xf32, #tpu.memory_space<vmem>>, vector<16x8xf32>
    %74 = vector.extract_strided_slice %20 {offsets = [13, 0, 0], sizes = [1, 8, 4], strides = [1, 1, 1]} : vector<16x8x4xf32> to vector<1x8x4xf32>
    %75 = vector.shape_cast %74 : vector<1x8x4xf32> to vector<8x4xf32>
    %cst_45 = arith.constant dense<0.000000e+00> : vector<16x4xf32>
    %76 = tpu.matmul %73, %75, %cst_45 {dimension_numbers = #tpu.dot_dimension_numbers<[1], [0], [0], [1], [0, 0, 1, 1], [], []>} : vector<16x8xf32>, vector<8x4xf32>, vector<16x4xf32> -> vector<16x4xf32>
    %c0_46 = arith.constant 0 : index
    %c0_47 = arith.constant 0 : index
    %77 = vector.load %arg5[%c0_46, %c0_47] : memref<16x8xf32, #tpu.memory_space<vmem>>, vector<16x8xf32>
    %78 = vector.extract_strided_slice %20 {offsets = [14, 0, 0], sizes = [1, 8, 4], strides = [1, 1, 1]} : vector<16x8x4xf32> to vector<1x8x4xf32>
    %79 = vector.shape_cast %78 : vector<1x8x4xf32> to vector<8x4xf32>
    %cst_48 = arith.constant dense<0.000000e+00> : vector<16x4xf32>
    %80 = tpu.matmul %77, %79, %cst_48 {dimension_numbers = #tpu.dot_dimension_numbers<[1], [0], [0], [1], [0, 0, 1, 1], [], []>} : vector<16x8xf32>, vector<8x4xf32>, vector<16x4xf32> -> vector<16x4xf32>
    %c0_49 = arith.constant 0 : index
    %c0_50 = arith.constant 0 : index
    %81 = vector.load %arg5[%c0_49, %c0_50] : memref<16x8xf32, #tpu.memory_space<vmem>>, vector<16x8xf32>
    %82 = vector.extract_strided_slice %20 {offsets = [15, 0, 0], sizes = [1, 8, 4], strides = [1, 1, 1]} : vector<16x8x4xf32> to vector<1x8x4xf32>
    %83 = vector.shape_cast %82 : vector<1x8x4xf32> to vector<8x4xf32>
    %cst_51 = arith.constant dense<0.000000e+00> : vector<16x4xf32>
    %84 = tpu.matmul %81, %83, %cst_51 {dimension_numbers = #tpu.dot_dimension_numbers<[1], [0], [0], [1], [0, 0, 1, 1], [], []>} : vector<16x8xf32>, vector<8x4xf32>, vector<16x4xf32> -> vector<16x4xf32>
    %85 = vector.shape_cast %24 : vector<16x4xf32> to vector<1x16x4xf32>
    %86 = vector.shape_cast %28 : vector<16x4xf32> to vector<1x16x4xf32>
    %87 = vector.shape_cast %32 : vector<16x4xf32> to vector<1x16x4xf32>
    %88 = vector.shape_cast %36 : vector<16x4xf32> to vector<1x16x4xf32>
    %89 = vector.shape_cast %40 : vector<16x4xf32> to vector<1x16x4xf32>
    %90 = vector.shape_cast %44 : vector<16x4xf32> to vector<1x16x4xf32>
    %91 = vector.shape_cast %48 : vector<16x4xf32> to vector<1x16x4xf32>
    %92 = vector.shape_cast %52 : vector<16x4xf32> to vector<1x16x4xf32>
    %93 = vector.shape_cast %56 : vector<16x4xf32> to vector<1x16x4xf32>
    %94 = vector.shape_cast %60 : vector<16x4xf32> to vector<1x16x4xf32>
    %95 = vector.shape_cast %64 : vector<16x4xf32> to vector<1x16x4xf32>
    %96 = vector.shape_cast %68 : vector<16x4xf32> to vector<1x16x4xf32>
    %97 = vector.shape_cast %72 : vector<16x4xf32> to vector<1x16x4xf32>
    %98 = vector.shape_cast %76 : vector<16x4xf32> to vector<1x16x4xf32>
    %99 = vector.shape_cast %80 : vector<16x4xf32> to vector<1x16x4xf32>
    %100 = vector.shape_cast %84 : vector<16x4xf32> to vector<1x16x4xf32>
    %101 = tpu.concatenate %85, %86, %87, %88, %89, %90, %91, %92, %93, %94, %95, %96, %97, %98, %99, %100 in 0 : vector<1x16x4xf32>, vector<1x16x4xf32>, vector<1x16x4xf32>, vector<1x16x4xf32>, vector<1x16x4xf32>, vector<1x16x4xf32>, vector<1x16x4xf32>, vector<1x16x4xf32>, vector<1x16x4xf32>, vector<1x16x4xf32>, vector<1x16x4xf32>, vector<1x16x4xf32>, vector<1x16x4xf32>, vector<1x16x4xf32>, vector<1x16x4xf32>, vector<1x16x4xf32> -> vector<16x16x4xf32>
    %c0_52 = arith.constant 0 : index
    %c0_53 = arith.constant 0 : index
    %c0_54 = arith.constant 0 : index
    %102 = vector.load %arg3[%c0_52, %c0_53, %c0_54] : memref<16x16x4xf32, #tpu.memory_space<vmem>>, vector<16x16x4xf32>
    %cst_55 = arith.constant 0.000000e+00 : f32
    %103 = vector.broadcast %cst_55 : f32 to vector<16x16x120xf32>
    %104 = tpu.concatenate %101, %102, %103 in 2 : vector<16x16x4xf32>, vector<16x16x4xf32>, vector<16x16x120xf32> -> vector<16x16x128xf32>
    %105 = arith.truncf %104 : vector<16x16x128xf32> to vector<16x16x128xbf16>
    %c0_56 = arith.constant 0 : index
    %c0_57 = arith.constant 0 : index
    %c0_58 = arith.constant 0 : index
    %106 = vector.load %arg6[%c0_56, %c0_57, %c0_58] : memref<16x16x128xbf16, #tpu.memory_space<vmem>>, vector<16x16x128xbf16>
    tpu.vector_store %arg6[%c0_56, %c0_57, %c0_58], %105 {strides = array<i32>} : memref<16x16x128xbf16, #tpu.memory_space<vmem>>, vector<16x16x128xbf16>,
    return
  }
  func.func @transform_0(%arg0: i32, %arg1: i32) -> (i32, i32, i32) {
    %c0_i32 = arith.constant 0 : i32
    %c0_i32_0 = arith.constant 0 : i32
    %c0_i32_1 = arith.constant 0 : i32
    return %arg0, %c0_i32, %c0_i32_0 : i32, i32, i32
  }
  func.func @transform_1(%arg0: i32, %arg1: i32) -> (i32, i32, i32) {
    %c1_i32 = arith.constant 1 : i32
    %0 = arith.muli %arg0, %c1_i32 : i32
    %1 = arith.addi %0, %arg1 : i32
    %c0_i32 = arith.constant 0 : i32
    %c0_i32_0 = arith.constant 0 : i32
    %c0_i32_1 = arith.constant 0 : i32
    return %1, %c0_i32, %c0_i32_0 : i32, i32, i32
  }
  func.func @transform_2(%arg0: i32, %arg1: i32) -> (i32, i32) {
    %c0_i32 = arith.constant 0 : i32
    %c0_i32_0 = arith.constant 0 : i32
    return %arg1, %c0_i32 : i32, i32
  }
  func.func @transform_3(%arg0: i32, %arg1: i32) -> (i32, i32) {
    %c0_i32 = arith.constant 0 : i32
    %c0_i32_0 = arith.constant 0 : i32
    %c0_i32_1 = arith.constant 0 : i32
    return %c0_i32, %c0_i32_0 : i32, i32
  }
  func.func @transform_4(%arg0: i32, %arg1: i32) -> (i32, i32, i32) {
    %c1_i32 = arith.constant 1 : i32
    %0 = arith.muli %arg0, %c1_i32 : i32
    %1 = arith.addi %0, %arg1 : i32
    %c0_i32 = arith.constant 0 : i32
    %c0_i32_0 = arith.constant 0 : i32
    %c0_i32_1 = arith.constant 0 : i32
    return %1, %c0_i32, %c0_i32_0 : i32, i32, i32
  }
}

</mosaic_0001>

<bundles_post_ra>
// kernel: tpu_custom_call.1
= control target key start
LH: loop header
LB: loop body
LE: loop exit
PB: predicated region body
PF: predicated region fallthrough
CT: control target
= control target key end

     0   :  { %9 = vsyncpa [#allocation3], 0  ;;  %s4088_s0 = inlined_call_operand.vmem [shape: f32[2,8,32], index: 0, kind: input, shape index: {}]   ;;  %s4089_s1 = inlined_call_operand.vmem [shape: f32[32,16,4], index: 1, kind: input, shape index: {}]   ;;  %s4090_s2 = inlined_call_operand.vmem [shape: f32[16,8], index: 2, kind: input, shape index: {}]   ;;  %s4091_s3 = inlined_call_operand.vmem [shape: f32[16,8], index: 3, kind: input, shape index: {}]   ;;  %s4092_s4 = inlined_call_operand.hbm [shape: bf16[32,16,128], index: 4, kind: output, shape index: {}]  }
   0x1   :  { %11 = vsyncpa [#allocation3 + $0x1], 0  ;;  %s3300_s15 = smov 0   ;;  %s3302_s16 = smov 0  }
   0x2   :  { %s3304_s17 = smov 0   ;;  %s3306_s18 = smov 0  }
   0x3   :  { %s3308_s19 = smov 0   ;;  %s3310_s20 = smov 0  }
   0x4 LB: > { %s2690_s21 = sadd.s32 4294967295, %s3262_s20   ;;  %s2691_s22 = sadd.s32 4294967294, %s3262_s20   ;;  %s3262_s20 = sphi %s3310_s20, %s17_s20   ;;  %s3258_s19 = sphi %s3308_s19, %s4099_s19   ;;  %s3254_s18 = sphi %s3306_s18, %s4098_s18   ;;  %s3250_s17 = sphi %s3304_s17, %s4097_s17   ;;  %s3246_s16 = sphi %s3302_s16, %s4096_s16   ;;  %s3242_s15 = sphi %s3300_s15, %s4095_s15  }
   0x5   : > { %s29_s23 = sadd.s32 1, %s3258_s19  ;;  %s139_s24 = sadd.s32 1, %s3250_s17 }
   0x6   : > { %p31_p0 = scmp.ge.s32.totalorder %s29_s23, 2  ;;  %p149_p1 = scmp.ne.s32.totalorder %s3250_s17, %s3246_s16 }
   0x7   : > { %p150_p2 = scmp.eq.s32.totalorder %s2690_s21, 1  ;;  %p155_p3 = scmp.ne.s32.totalorder %s3246_s16, %s3242_s15 }
   0x8   : > { %s4101_s23 = smov (%p31_p0, %s29_s23), 0  ;;  %p156_p5 = scmp.eq.s32.totalorder %s2691_s22, 1 }
   0x9   : > { %p3340_p4 = por %p150_p2, %p149_p1  ;;  %s136_s26 = ssub.s32 %s3258_s19, %s4101_s23 }
   0xa   : > { %p2695_p6 = scmp.ge.s32.totalorder %s3262_s20, 1  ;;  %p137_p7 = scmp.eq.s32.totalorder %s136_s26, 0 }
   0xb   : > { %p3347_p8 = por %p156_p5, %p155_p3  ;;  %p205_p9 = scmp.lt.s32.totalorder %s3262_s20, 3 }
   0xc   : > { %s3353_s28 = scalar_select %p137_p7, %s3250_s17, %s139_s24  }
   0xd   : > { %p206_p10 = pnand %p2695_p6, %p205_p9 }
   0xe   : > { %p242_p11 = scmp.lt.s32.totalorder (!%p206_p10), %s3254_s18, 1  ;;  %v263_v0 = vld [vmem:[%s4090_s2] sm:$0xff] (!%p206_p10)  ;;  %vm266_vm0 = vcmask (!%p206_p10), 64512   ;;  %v264_v2 = vld [vmem:[%s4090_s2 + $0x8] sm:$0xff] (!%p206_p10)  ;;  %v3264_v3 = vmov (!%p206_p10), 1966171168   ;;  %v354_v5 = vlaneseq (!%p206_p10) }
   0xf   : > { %209 = sbr.rel (%p206_p10) target bundleno = 820 (0x334), region = 36  ;;  %2956 = vmatprep.mubr.msk.f32.mxu0 (!%p206_p10), %vm266_vm0, %v263_v0  ;;  %v352_v4 = vunpack.c.l.s4 (!%p206_p10), %v3264_v3  ;;  %s3265_s12 = smov (!%p206_p10), 124   ;;  %v3523_v58 = vld [vmem:[%s4091_s3] sm:$0xff] (!%p206_p10)  ;;  %vm864_vm1 = vcmask (!%p206_p10), 1040384   ;;  %vm881_vm2 = vcmask (!%p206_p10), 1041408   ;;  %vm898_vm3 = vcmask (!%p206_p10), 1042432  }
  0x10   : > { %v355_v7 = vshrl.u32 (!%p206_p10), %v354_v5, 7  ;;  %s3266_s13 = smov (!%p206_p10), 120   ;;  %s3267_s14 = smov (!%p206_p10), 116   ;;  %2961 = vmatprep.mubr.msk.f32.mxu1 (!%p206_p10), %vm266_vm0, %v3523_v58  ;;  %vm915_vm4 = vcmask (!%p206_p10), 1043456   ;;  %vm932_vm5 = vcmask (!%p206_p10), 1044480   ;;  %vm949_vm6 = vcmask (!%p206_p10), 1045504  }
  0x11   : > { %v353_v6 = vunpack.c.0.s8 (!%p206_p10), %v352_v4  ;;  %s3268_s21 = smov (!%p206_p10), 112   ;;  %s3269_s22 = smov (!%p206_p10), 108   ;;  %vm966_vm7 = vcmask (!%p206_p10), 1046528   ;;  %vm2351_vm8 = vcmask (!%p206_p10), 31744  }
  0x12   : > { %v3368_v13 = vsub.s32 (!%p206_p10), 0, %v355_v7  ;;  %s3270_s24 = smov (!%p206_p10), 104   ;;  %s3271_s26 = smov (!%p206_p10), 100  }
  0x13   : > { %v356_v8 = vsub.s32 (!%p206_p10), %v353_v6, %v355_v7  ;;  %s2698_s7 = sshll.u32 (!%p206_p10), %s3254_s18, 4 }
  0x14   : > { %p248_p12 = scmp.lt.s32.totalorder (!%p206_p10), %s2698_s7, 31 }
  0x16   : > { %s243_s5 = scalar_select %p242_p11, %s3254_s18, 1 }
  0x17   : > { %s4103_s7 = smov (!%p248_p12, %s2698_s7), 31 }
  0x18   : > { %s2697_s6 = sshll.u32 %s243_s5, 3  ;;  %s2773_s8 = sshll.u32 %s4103_s7, 4 }
  0x19   : > { %s245_s9 = scalar_lea.vmem %s4088_s0, %s2697_s6  ;;  %s3691_s11 = scalar_lea.vmem %s4089_s1, %s2773_s8 }
  0x1a   : > { %v265_v1 = vld [vmem:[%s245_s9] sm:$0xff]  ;;  %s3273_s6 = smov [#allocation2]  }
  0x1b   : > { %2954 = vmatprep.subr.mxu0 %v265_v1  ;;  %s3188_s7 = sshll.u32 %s3273_s6, 4  ;;  %s3189_s7 = int_to_ptr.vmem [resolvable:$false] %s3188_s7 }
  0x1c   : > { %2955 = vmatpush3.msra.mxu0 %v265_v1  ;;  %s3190_s8 = scalar_lea.vmem %s3189_s7, 4096 }
  0x1d   : > { %2957 = vmatmul.mubr.msk.f32.vlgmr.msra.gmra.mrb[0].mxu0 %vm266_vm0, %v264_v2 }
  0x1e   : > { %2966 = vmatprep.mubr.msk.f32.mxu0 %vm266_vm0, %v3523_v58 }
  0xf0   : > { %v2958_v9 = vpop.f32.mrb[0].mxu0 }
  0xf1   : > { %v399_v10 = vcombine.high %v2958_v9, %v2958_v9  ;;  %v406_v11 = vrot.slane %v2958_v9, %v356_v8  ;;  %v339_v12 = vpop.f32.mrb[1].mxu0 }
  0xf2   : > { %v350_v14 = vcombine.high %v339_v12, %v339_v12  ;;  %v357_v15 = vrot.slane %v339_v12, %v356_v8 }
  0xf3   : > { %v413_v16 = vrot.slane %v399_v10, %v356_v8  ;;  %v3370_v17 = vrot.slane %v406_v11, %v356_v8  ;;  %v414_v19 = vcombine.high %v406_v11, %v406_v11 }
  0xf4   : > { %v364_v18 = vrot.slane %v350_v14, %v356_v8  ;;  %v3376_v24 = vrot.slane %v357_v15, %v356_v8  ;;  %v365_v31 = vcombine.high %v357_v15, %v357_v15 }
  0xf5   : > { %v415_v20 = vcombine.high %v413_v16, %v413_v16  ;;  %v3372_v21 = vrot.slane %v413_v16, %v356_v8  ;;  %v499_v22 = vrot.slane %v3370_v17, %v3368_v13  ;;  %v3385_v28 = vrot.slane %v414_v19, %v356_v8 }
  0xf6   : > { %v366_v23 = vcombine.high %v364_v18, %v364_v18  ;;  %v3378_v25 = vrot.slane %v364_v18, %v356_v8  ;;  %v467_v29 = vrot.slane %v3376_v24, %v3368_v13  ;;  %v3405_v32 = vrot.slane %v365_v31, %v356_v8  ;;  %v3576_v18 = vld [vmem:[%s4091_s3 + $0x8] sm:$0xff] }
  0xf7   : > { %v3380_v26 = vrot.slane %v415_v20, %v356_v8  ;;  %544 = vrot.lane.b32.xlu0 %v499_v22, %s3265_s12  ;;  %v503_v30 = vrot.slane %v3385_v28, %v3368_v13  ;;  %v3419_v34 = vcombine.high %v3370_v17, %v3370_v17  ;;  %v3429_v36 = vcombine.high %v3385_v28, %v3385_v28 }
  0xf8   : > { %v3382_v27 = vrot.slane %v366_v23, %v356_v8  ;;  %576 = vrot.lane.b32.xlu1 %v467_v29, %s3266_s13  ;;  %v471_v33 = vrot.slane %v3405_v32, %v3368_v13  ;;  %v515_v38 = vrot.slane %v3372_v21, %v3368_v13  ;;  %v3465_v40 = vcombine.high %v3376_v24, %v3376_v24 }
  0xf9   : > { %v507_v35 = vrot.slane %v3419_v34, %v3368_v13  ;;  %v511_v37 = vrot.slane %v3429_v36, %v3368_v13  ;;  %v519_v39 = vrot.slane %v3380_v26, %v3368_v13  ;;  %v3471_v41 = vcombine.high %v3405_v32, %v3405_v32 }
  0xfa   : > { %v475_v42 = vrot.slane %v3465_v40, %v3368_v13  ;;  %v483_v50 = vrot.slane %v3378_v25, %v3368_v13  ;;  %v3503_v52 = vrot.slane %v3382_v27, %v3368_v13  ;;  %v3567_v12 = vcombine.high %v3372_v21, %v3372_v21 }
  0xfb   : > { %592 = vrot.lane.b32.xlu0 %v499_v22, %s3266_s13  ;;  %v479_v43 = vrot.slane %v3471_v41, %v3368_v13  ;;  %v3581_v19 = vcombine.high %v3380_v26, %v3380_v26 }
  0xfc   : > { %546 = vrot.lane.b32.xlu1 %v503_v30, %s3265_s12 }
  0xff   : > { %640 = vrot.lane.b32.xlu0 %v499_v22, %s3267_s14 }
 0x100   : > { %594 = vrot.lane.b32.xlu1 %v503_v30, %s3266_s13 }
 0x103   : > { %688 = vrot.lane.b32.xlu0 %v499_v22, %s3268_s21 }
 0x104   : > { %642 = vrot.lane.b32.xlu1 %v503_v30, %s3267_s14 }
 0x107   : > { %736 = vrot.lane.b32.xlu0 %v499_v22, %s3269_s22 }
 0x108   : > { %690 = vrot.lane.b32.xlu1 %v503_v30, %s3268_s21 }
 0x10b   : > { %784 = vrot.lane.b32.xlu0 %v499_v22, %s3270_s24 }
 0x10c   : > { %738 = vrot.lane.b32.xlu1 %v503_v30, %s3269_s22 }
 0x10f   : > { %832 = vrot.lane.b32.xlu0 %v499_v22, %s3271_s26  ;;  %v3587_v22 = vrot.slane %v3567_v12, %v3368_v13 }
 0x110   : > { %786 = vrot.lane.b32.xlu1 %v503_v30, %s3270_s24 }
 0x113   : > { %528 = vrot.lane.b32.xlu0 %v467_v29, %s3265_s12 }
 0x114   : > { %834 = vrot.lane.b32.xlu1 %v503_v30, %s3271_s26 }
 0x117   : > { %624 = vrot.lane.b32.xlu0 %v467_v29, %s3267_s14 }
 0x118   : > { %578 = vrot.lane.b32.xlu1 %v471_v33, %s3266_s13 }
 0x11b   : > { %672 = vrot.lane.b32.xlu0 %v467_v29, %s3268_s21 }
 0x11c   : > { %626 = vrot.lane.b32.xlu1 %v471_v33, %s3267_s14 }
 0x11f   : > { %720 = vrot.lane.b32.xlu0 %v467_v29, %s3269_s22 }
 0x120   : > { %674 = vrot.lane.b32.xlu1 %v471_v33, %s3268_s21 }
 0x123   : > { %768 = vrot.lane.b32.xlu0 %v467_v29, %s3270_s24 }
 0x124   : > { %722 = vrot.lane.b32.xlu1 %v471_v33, %s3269_s22 }
 0x127   : > { %816 = vrot.lane.b32.xlu0 %v467_v29, %s3271_s26 }
 0x128   : > { %770 = vrot.lane.b32.xlu1 %v471_v33, %s3270_s24 }
 0x12b   : > { %548 = vrot.lane.b32.xlu0 %v507_v35, %s3265_s12 }
 0x12c   : > { %818 = vrot.lane.b32.xlu1 %v471_v33, %s3271_s26 }
 0x12f   : > { %596 = vrot.lane.b32.xlu0 %v507_v35, %s3266_s13 }
 0x130   : > { %550 = vrot.lane.b32.xlu1 %v511_v37, %s3265_s12 }
 0x133   : > { %644 = vrot.lane.b32.xlu0 %v507_v35, %s3267_s14 }
 0x134   : > { %598 = vrot.lane.b32.xlu1 %v511_v37, %s3266_s13 }
 0x137   : > { %692 = vrot.lane.b32.xlu0 %v507_v35, %s3268_s21 }
 0x138   : > { %646 = vrot.lane.b32.xlu1 %v511_v37, %s3267_s14 }
 0x13b   : > { %552 = vrot.lane.b32.xlu0 %v515_v38, %s3265_s12 }
 0x13c   : > { %694 = vrot.lane.b32.xlu1 %v511_v37, %s3268_s21 }
 0x13f   : > { %740 = vrot.lane.b32.xlu0 %v507_v35, %s3269_s22 }
 0x140   : > { %554 = vrot.lane.b32.xlu1 %v519_v39, %s3265_s12 }
 0x143   : > { %600 = vrot.lane.b32.xlu0 %v515_v38, %s3266_s13 }
 0x144   : > { %742 = vrot.lane.b32.xlu1 %v511_v37, %s3269_s22 }
 0x147   : > { %788 = vrot.lane.b32.xlu0 %v507_v35, %s3270_s24 }
 0x148   : > { %602 = vrot.lane.b32.xlu1 %v519_v39, %s3266_s13 }
 0x14b   : > { %648 = vrot.lane.b32.xlu0 %v515_v38, %s3267_s14 }
 0x14c   : > { %790 = vrot.lane.b32.xlu1 %v511_v37, %s3270_s24 }
 0x14f   : > { %836 = vrot.lane.b32.xlu0 %v507_v35, %s3271_s26 }
 0x150   : > { %650 = vrot.lane.b32.xlu1 %v519_v39, %s3267_s14 }
 0x153   : > { %696 = vrot.lane.b32.xlu0 %v515_v38, %s3268_s21 }
 0x154   : > { %838 = vrot.lane.b32.xlu1 %v511_v37, %s3271_s26 }
 0x157   : > { %744 = vrot.lane.b32.xlu0 %v515_v38, %s3269_s22 }
 0x158   : > { %698 = vrot.lane.b32.xlu1 %v519_v39, %s3268_s21 }
 0x15b   : > { %792 = vrot.lane.b32.xlu0 %v515_v38, %s3270_s24 }
 0x15c   : > { %746 = vrot.lane.b32.xlu1 %v519_v39, %s3269_s22 }
 0x15f   : > { %840 = vrot.lane.b32.xlu0 %v515_v38, %s3271_s26  ;;  %v3619_v38 = vcombine.high %v3382_v27, %v3382_v27 }
 0x160   : > { %794 = vrot.lane.b32.xlu1 %v519_v39, %s3270_s24 }
 0x163   : > { %530 = vrot.lane.b32.xlu0 %v471_v33, %s3265_s12  ;;  %v3609_v33 = vcombine.high %v3378_v25, %v3378_v25 }
 0x164   : > { %842 = vrot.lane.b32.xlu1 %v519_v39, %s3271_s26 }
 0x167   : > { %532 = vrot.lane.b32.xlu0 %v475_v42, %s3265_s12 }
 0x168   : > { %534 = vrot.lane.b32.xlu1 %v479_v43, %s3265_s12 }
 0x169   : > { %v3479_v44 = vpop.permute.xlu0 %544 }
 0x16a   : > { %v577_v45 = vpop.permute.xlu1 %576 }
 0x16b   : > { %580 = vrot.lane.b32.xlu0 %v475_v42, %s3266_s13 }
 0x16c   : > { %582 = vrot.lane.b32.xlu1 %v479_v43, %s3266_s13 }
 0x16d   : > { %v3483_v46 = vpop.permute.xlu0 %592 }
 0x16e   : > { %v3487_v47 = vpop.permute.xlu1 %546 }
 0x16f   : > { %628 = vrot.lane.b32.xlu0 %v475_v42, %s3267_s14 }
 0x170   : > { %630 = vrot.lane.b32.xlu1 %v479_v43, %s3267_s14 }
 0x171   : > { %v3489_v48 = vpop.permute.xlu0 %640 }
 0x172   : > { %v3493_v49 = vpop.permute.xlu1 %594 }
 0x173   : > { %676 = vrot.lane.b32.xlu0 %v475_v42, %s3268_s21 }
 0x174   : > { %678 = vrot.lane.b32.xlu1 %v479_v43, %s3268_s21 }
 0x175   : > { %v3497_v51 = vpop.permute.xlu0 %688 }
 0x176   : > { %v3505_v53 = vpop.permute.xlu1 %642 }
 0x177   : > { %536 = vrot.lane.b32.xlu0 %v483_v50, %s3265_s12 }
 0x178   : > { %538 = vrot.lane.b32.xlu1 %v3503_v52, %s3265_s12 }
 0x179   : > { %v3507_v54 = vpop.permute.xlu0 %736 }
 0x17a   : > { %v3512_v55 = vpop.permute.xlu1 %690 }
 0x17b   : > { %724 = vrot.lane.b32.xlu0 %v475_v42, %s3269_s22 }
 0x17c   : > { %726 = vrot.lane.b32.xlu1 %v479_v43, %s3269_s22 }
 0x17d   : > { %v3514_v56 = vpop.permute.xlu0 %784 }
 0x17e   : > { %v3518_v57 = vpop.permute.xlu1 %738 }
 0x17f   : > { %584 = vrot.lane.b32.xlu0 %v483_v50, %s3266_s13 }
 0x180   : > { %586 = vrot.lane.b32.xlu1 %v3503_v52, %s3266_s13 }
 0x181   : > { %v3525_v59 = vpop.permute.xlu0 %832 }
 0x182   : > { %v3534_v60 = vpop.permute.xlu1 %786 }
 0x183   : > { %772 = vrot.lane.b32.xlu0 %v475_v42, %s3270_s24 }
 0x184   : > { %774 = vrot.lane.b32.xlu1 %v479_v43, %s3270_s24 }
 0x185   : > { %v529_v61 = vpop.permute.xlu0 %528 }
 0x186   : > { %v3538_v62 = vpop.permute.xlu1 %834  ;;  %v865_v4 = vsel %vm864_vm1, %v3376_v24, %v529_v61  ;;  %v3599_v24 = vrot.slane %v3581_v19, %v3368_v13  ;;  %v495_v61 = vrot.slane %v3619_v38, %v3368_v13 }
 0x187   : > { %632 = vrot.lane.b32.xlu0 %v483_v50, %s3267_s14  ;;  %v882_v6 = vsel %vm881_vm2, %v865_v4, %v577_v45 }
 0x188   : > { %634 = vrot.lane.b32.xlu1 %v3503_v52, %s3267_s14 }
 0x189   : > { %v625_v63 = vpop.permute.xlu0 %624 }
 0x18a   : > { %v3543_v0 = vpop.permute.xlu1 %578  ;;  %v899_v8 = vsel %vm898_vm3, %v882_v6, %v625_v63 }
 0x18b   : > { %820 = vrot.lane.b32.xlu0 %v475_v42, %s3271_s26 }
 0x18c   : > { %822 = vrot.lane.b32.xlu1 %v479_v43, %s3271_s26  ;;  %v491_v43 = vrot.slane %v3609_v33, %v3368_v13 }
 0x18d   : > { %v673_v1 = vpop.permute.xlu0 %672 }
 0x18e   : > { %v3547_v2 = vpop.permute.xlu1 %626  ;;  %v916_v9 = vsel %vm915_vm4, %v899_v8, %v673_v1 }
 0x18f   : > { %680 = vrot.lane.b32.xlu0 %v483_v50, %s3268_s21 }
 0x190   : > { %682 = vrot.lane.b32.xlu1 %v3503_v52, %s3268_s21 }
 0x191   : > { %v721_v3 = vpop.permute.xlu0 %720 }
 0x192   : > { %v3554_v5 = vpop.permute.xlu1 %674  ;;  %v933_v10 = vsel %vm932_vm5, %v916_v9, %v721_v3 }
 0x193   : > { %728 = vrot.lane.b32.xlu0 %v483_v50, %s3269_s22 }
 0x194   : > { %730 = vrot.lane.b32.xlu1 %v3503_v52, %s3269_s22 }
 0x195   : > { %v769_v7 = vpop.permute.xlu0 %768 }
 0x196   : > { %v3563_v11 = vpop.permute.xlu1 %722  ;;  %v950_v14 = vsel %vm949_vm6, %v933_v10, %v769_v7 }
 0x197   : > { %776 = vrot.lane.b32.xlu0 %v483_v50, %s3270_s24 }
 0x198   : > { %778 = vrot.lane.b32.xlu1 %v3503_v52, %s3270_s24 }
 0x199   : > { %v817_v15 = vpop.permute.xlu0 %816 }
 0x19a   : > { %v967_v16 = vsel %vm966_vm7, %v950_v14, %v817_v15  ;;  %v3583_v20 = vpop.permute.xlu1 %770 }
 0x19b   : > { %2959 = vmatprep.subr.mxu1 %v967_v16  ;;  %824 = vrot.lane.b32.xlu0 %v483_v50, %s3271_s26 }
 0x19c   : > { %2960 = vmatpush3.msra.mxu1 %v967_v16  ;;  %826 = vrot.lane.b32.xlu1 %v3503_v52, %s3271_s26 }
 0x19d   : > { %v549_v23 = vpop.permute.xlu0 %548  ;;  %2962 = vmatmul.mubr.msk.f32.vlgmr.msra.gmra.mrb[0].mxu1 %vm266_vm0, %v3576_v18 }
 0x19e   : > { %2971 = vmatprep.mubr.msk.f32.mxu1 %vm266_vm0, %v3523_v58  ;;  %v3601_v29 = vpop.permute.xlu1 %818  ;;  %v875_v37 = vsel %vm864_vm1, %v3419_v34, %v549_v23 }
 0x19f   : > { %556 = vrot.lane.b32.xlu0 %v3587_v22, %s3265_s12 }
 0x1a0   : > { %558 = vrot.lane.b32.xlu1 %v3599_v24, %s3265_s12 }
 0x1a1   : > { %v597_v30 = vpop.permute.xlu0 %596 }
 0x1a2   : > { %v551_v31 = vpop.permute.xlu1 %550  ;;  %v892_v39 = vsel %vm881_vm2, %v875_v37, %v597_v30 }
 0x1a3   : > { %604 = vrot.lane.b32.xlu0 %v3587_v22, %s3266_s13  ;;  %v876_v52 = vsel %vm864_vm1, %v3429_v36, %v551_v31 }
 0x1a4   : > { %606 = vrot.lane.b32.xlu1 %v3599_v24, %s3266_s13 }
 0x1a5   : > { %v645_v35 = vpop.permute.xlu0 %644 }
 0x1a6   : > { %v599_v42 = vpop.permute.xlu1 %598  ;;  %v909_v45 = vsel %vm898_vm3, %v892_v39, %v645_v35 }
 0x1a7   : > { %652 = vrot.lane.b32.xlu0 %v3587_v22, %s3267_s14  ;;  %v893_v63 = vsel %vm881_vm2, %v876_v52, %v599_v42 }
 0x1a8   : > { %654 = vrot.lane.b32.xlu1 %v3599_v24, %s3267_s14 }
 0x1a9   : > { %v693_v50 = vpop.permute.xlu0 %692 }
 0x1aa   : > { %v926_v34 = vsel %vm915_vm4, %v909_v45, %v693_v50  ;;  %v647_v1 = vpop.permute.xlu1 %646 }
 0x1ab   : > { %540 = vrot.lane.b32.xlu0 %v491_v43, %s3265_s12  ;;  %v910_v3 = vsel %vm898_vm3, %v893_v63, %v647_v1 }
 0x1ac   : > { %542 = vrot.lane.b32.xlu1 %v495_v61, %s3265_s12  ;;  %s3272_s12 = smov 4  }
 0x1ad   : > { %v553_v4 = vpop.permute.xlu0 %552 }
 0x1ae   : > { %v695_v6 = vpop.permute.xlu1 %694  ;;  %v877_v9 = vsel %vm864_vm1, %v3372_v21, %v553_v4 }
 0x1af   : > { %588 = vrot.lane.b32.xlu0 %v491_v43, %s3266_s13  ;;  %v927_v7 = vsel %vm915_vm4, %v910_v3, %v695_v6 }
 0x1b0   : > { %590 = vrot.lane.b32.xlu1 %v495_v61, %s3266_s13  ;;  %s239_s13 = sand.u32 1, %s3246_s16  }
 0x1b1   : > { %v741_v8 = vpop.permute.xlu0 %740 }
 0x1b2   : > { %v943_v36 = vsel %vm932_vm5, %v926_v34, %v741_v8  ;;  %v555_v13 = vpop.permute.xlu1 %554 }
 0x1b3   : > { %636 = vrot.lane.b32.xlu0 %v491_v43, %s3267_s14  ;;  %v878_v21 = vsel %vm864_vm1, %v3380_v26, %v555_v13 }
 0x1b4   : > { %638 = vrot.lane.b32.xlu1 %v495_v61, %s3267_s14  ;;  %s2696_s14 = sshll.u32 %s239_s13, 7 }
 0x1b5   : > { %v601_v10 = vpop.permute.xlu0 %600 }
 0x1b6   : > { %v894_v14 = vsel %vm881_vm2, %v877_v9, %v601_v10  ;;  %v743_v15 = vpop.permute.xlu1 %742 }
 0x1b7   : > { %684 = vrot.lane.b32.xlu0 %v491_v43, %s3268_s21  ;;  %v944_v16 = vsel %vm932_vm5, %v927_v7, %v743_v15  ;;  %v2191_v15 = vld [vmem:[%s3691_s11] sm:$0xff] }
 0x1b8   : > { %686 = vrot.lane.b32.xlu1 %v495_v61, %s3268_s21 }
 0x1b9   : > { %v789_v23 = vpop.permute.xlu0 %788 }
 0x1ba   : > { %v960_v30 = vsel %vm949_vm6, %v943_v36, %v789_v23  ;;  %v603_v31 = vpop.permute.xlu1 %602  ;;  %v2193_v23 = vld [vmem:[%s3691_s11 + $0x10] sm:$0xff] }
 0x1bb   : > { %732 = vrot.lane.b32.xlu0 %v491_v43, %s3269_s22  ;;  %v895_v35 = vsel %vm881_vm2, %v878_v21, %v603_v31  ;;  %v2194_v31 = vld [vmem:[%s3691_s11 + $0x18] sm:$0xff] }
 0x1bc   : > { %734 = vrot.lane.b32.xlu1 %v495_v61, %s3269_s22 }
 0x1bd   : > { %v649_v37 = vpop.permute.xlu0 %648 }
 0x1be   : > { %v911_v39 = vsel %vm898_vm3, %v894_v14, %v649_v37  ;;  %v791_v42 = vpop.permute.xlu1 %790  ;;  %v2196_v37 = vld [vmem:[%s3691_s11 + $0x28] sm:$0xff] }
 0x1bf   : > { %780 = vrot.lane.b32.xlu0 %v491_v43, %s3270_s24  ;;  %v961_v45 = vsel %vm949_vm6, %v944_v16, %v791_v42  ;;  %v2192_v16 = vld [vmem:[%s3691_s11 + $0x8] sm:$0xff] }
 0x1c0   : > { %782 = vrot.lane.b32.xlu1 %v495_v61, %s3270_s24  ;;  %v3104_v21 = vpack.i.bf16 %v2192_v16, %v2191_v15 }
 0x1c1   : > { %v837_v50 = vpop.permute.xlu0 %836 }
 0x1c2   : > { %v3659_v34 = vsel %vm966_vm7, %v960_v30, %v837_v50  ;;  %v651_v26 = vpop.permute.xlu1 %650 }
 0x1c3   : > { %828 = vrot.lane.b32.xlu0 %v491_v43, %s3271_s26  ;;  %v912_v52 = vsel %vm898_vm3, %v895_v35, %v651_v26  ;;  %v2195_v35 = vld [vmem:[%s3691_s11 + $0x20] sm:$0xff] }
 0x1c4   : > { %830 = vrot.lane.b32.xlu1 %v495_v61, %s3271_s26  ;;  %v3114_v26 = vpack.i.bf16 %v2196_v37, %v2195_v35 }
 0x1c5   : > { %v697_v63 = vpop.permute.xlu0 %696 }
 0x1c6   : > { %v928_v1 = vsel %vm915_vm4, %v911_v39, %v697_v63  ;;  %v839_v3 = vpop.permute.xlu1 %838  ;;  %v2198_v63 = vld [vmem:[%s3691_s11 + $0x38] sm:$0xff] }
 0x1c7   : > { %700 = vrot.lane.b32.xlu0 %v3587_v22, %s3268_s21  ;;  %v3668_v6 = vsel %vm966_vm7, %v961_v45, %v839_v3  ;;  %v3109_v45 = vpack.i.bf16 %v2194_v31, %v2193_v23  ;;  %v2206_v23 = vld [vmem:[%s3691_s11 + $0x78] sm:$0xff]  ;;  %v2208_v31 = vld [vmem:[%s3691_s11 + $0x88] sm:$0xff] }
 0x1c8   : > { %702 = vrot.lane.b32.xlu1 %v3599_v24, %s3268_s21  ;;  %s3952_s21 = scalar_lea.vmem [#allocation2], %s2696_s14 }
 0x1c9   : > { %v745_v4 = vpop.permute.xlu0 %744 }
 0x1ca   : > { %v945_v43 = vsel %vm932_vm5, %v928_v1, %v745_v4  ;;  %v699_v7 = vpop.permute.xlu1 %698 }
 0x1cb   : > { %748 = vrot.lane.b32.xlu0 %v3587_v22, %s3269_s22  ;;  %v929_v61 = vsel %vm915_vm4, %v912_v52, %v699_v7  ;;  %v2197_v52 = vld [vmem:[%s3691_s11 + $0x30] sm:$0xff] }
 0x1cc   : > { %750 = vrot.lane.b32.xlu1 %v3599_v24, %s3269_s22  ;;  %s2807_s22 = sshll.u32 %s3254_s18, 11  ;;  %s4041_s18 = scalar_lea.sflag [#allocation3], %s239_s13 }
 0x1cd   : > { %v793_v8 = vpop.permute.xlu0 %792  ;;  %s4033_s30 = scalar_lea.hbm %s4092_s4, %s2807_s22 }
 0x1ce   : > { %v962_v36 = vsel %vm949_vm6, %v945_v43, %v793_v8  ;;  %v747_v13 = vpop.permute.xlu1 %746 }
 0x1cf   : > { %796 = vrot.lane.b32.xlu0 %v3587_v22, %s3270_s24  ;;  %v946_v9 = vsel %vm932_vm5, %v929_v61, %v747_v13  ;;  %v3119_v61 = vpack.i.bf16 %v2198_v63, %v2197_v52  ;;  %v2202_v13 = vld [vmem:[%s3691_s11 + $0x58] sm:$0xff] }
 0x1d0   : > { %798 = vrot.lane.b32.xlu1 %v3599_v24, %s3270_s24  ;;  %s2592_s24 = sshll.u32 %s3952_s21, 4  ;;  %s4036_s24 = int_to_ptr.vmem [resolvable:$true] %s2592_s24 }
 0x1d1   : > { %v841_v10 = vpop.permute.xlu0 %840  ;;  %s3184_s5 = scalar_lea.vmem %s4036_s24, 2048  ;;  %p3191_p2 = scmp.lt.s32.totalorder %s4036_s24, %s3189_s7 }
 0x1d2   : > { %v3686_v14 = vsel %vm966_vm7, %v962_v36, %v841_v10  ;;  %v795_v30 = vpop.permute.xlu1 %794  ;;  %v2201_v36 = vld [vmem:[%s3691_s11 + $0x50] sm:$0xff]  ;;  %v2204_v10 = vld [vmem:[%s3691_s11 + $0x68] sm:$0xff]  ;;  %p3185_p13 = scmp.ne.s32.totalorder %s4036_s24, %s3184_s5  ;;  %p3192_p3 = scmp.lt.s32.totalorder %s3190_s8, %s3184_s5 }
 0x1d3   : > { %844 = vrot.lane.b32.xlu0 %v3587_v22, %s3271_s26  ;;  %v963_v39 = vsel %vm949_vm6, %v946_v9, %v795_v30 }
 0x1d4   : > { %846 = vrot.lane.b32.xlu1 %v3599_v24, %s3271_s26  ;;  %v2199_v24 = vld [vmem:[%s3691_s11 + $0x40] sm:$0xff]  ;;  %p3186_p0 = pnand %p3185_p13, %p3340_p4  ;;  %p3193_p5 = por %p3192_p3, %p3191_p2 }
 0x1d5   : > { %v531_v42 = vpop.permute.xlu0 %530 }
 0x1d6   : > { %v866_v22 = vsel %vm864_vm1, %v3405_v32, %v531_v42  ;;  %v843_v3 = vpop.permute.xlu1 %842  ;;  %v2200_v32 = vld [vmem:[%s3691_s11 + $0x48] sm:$0xff]  ;;  %v2209_v42 = vld [vmem:[%s3691_s11 + $0x90] sm:$0xff]  ;;  %p3187_p1 = pneg %p3186_p0 }
 0x1d7   : > { %v883_v50 = vsel %vm881_vm2, %v866_v22, %v3543_v0  ;;  %3105 = vrot.lane.b32.xlu0 %v3104_v21, %s3272_s12  ;;  %v3720_v43 = vsel %vm966_vm7, %v963_v39, %v843_v3  ;;  %v3124_v8 = vpack.i.bf16 %v2200_v32, %v2199_v24  ;;  %v2207_v21 = vld [vmem:[%s3691_s11 + $0x80] sm:$0xff]  ;;  %v2210_v22 = vld [vmem:[%s3691_s11 + $0x98] sm:$0xff]  ;;  %v2213_v3 = vld [vmem:[%s3691_s11 + $0xb0] sm:$0xff] }
 0x1d8   : > { %v900_v1 = vsel %vm898_vm3, %v883_v50, %v3547_v2  ;;  %3110 = vrot.lane.b32.xlu1 %v3109_v45, %s3272_s12  ;;  %v3144_v39 = vpack.i.bf16 %v2208_v31, %v2207_v21  ;;  %v2211_v50 = vld [vmem:[%s3691_s11 + $0xa0] sm:$0xff]  ;;  %v3149_v63 = vpack.i.bf16 %v2210_v22, %v2209_v42  ;;  %v2214_v24 = vld [vmem:[%s3691_s11 + $0xb8] sm:$0xff]  ;;  %p3194_p6 = pnand %p3193_p5, %p3187_p1 }
 0x1d9   : > { %v3715_v4 = vpop.permute.xlu0 %532  ;;  %v917_v0 = vsel %vm915_vm4, %v900_v1, %v3554_v5  ;;  %v2222_v21 = vld [vmem:[%s3691_s11 + $0xf8] sm:$0xff] }
 0x1da   : > { %v934_v7 = vsel %vm932_vm5, %v917_v0, %v3563_v11  ;;  %v3730_v5 = vpop.permute.xlu1 %534  ;;  %v2203_v11 = vld [vmem:[%s3691_s11 + $0x60] sm:$0xff] }
 0x1db   : > { %v951_v2 = vsel %vm949_vm6, %v934_v7, %v3583_v20  ;;  %3115 = vrot.lane.b32.xlu0 %v3114_v26, %s3272_s12  ;;  %v3129_v20 = vpack.i.bf16 %v2202_v13, %v2201_v36  ;;  %v3134_v16 = vpack.i.bf16 %v2204_v10, %v2203_v11  ;;  %v2212_v26 = vld [vmem:[%s3691_s11 + $0xa8] sm:$0xff]  ;;  %v2215_v0 = vld [vmem:[%s3691_s11 + $0xc0] sm:$0xff]  ;;  %v2217_v36 = vld [vmem:[%s3691_s11 + $0xd0] sm:$0xff] }
 0x1dc   : > { %v968_v9 = vsel %vm966_vm7, %v951_v2, %v3601_v29  ;;  %3120 = vrot.lane.b32.xlu1 %v3119_v61, %s3272_s12  ;;  %v2205_v29 = vld [vmem:[%s3691_s11 + $0x70] sm:$0xff]  ;;  %v3154_v1 = vpack.i.bf16 %v2212_v26, %v2211_v50  ;;  %v2216_v7 = vld [vmem:[%s3691_s11 + $0xc8] sm:$0xff]  ;;  %v3159_v2 = vpack.i.bf16 %v2214_v24, %v2213_v3  ;;  %v2218_v13 = vld [vmem:[%s3691_s11 + $0xd8] sm:$0xff]  ;;  %v867_v50 = vsel %vm864_vm1, %v3465_v40, %v3715_v4 }
 0x1dd   : > { %2964 = vmatprep.subr.mxu0 %v968_v9  ;;  %v581_v15 = vpop.permute.xlu0 %580  ;;  %v3139_v37 = vpack.i.bf16 %v2206_v23, %v2205_v29  ;;  %v2219_v11 = vld [vmem:[%s3691_s11 + $0xe0] sm:$0xff]  ;;  %v2220_v10 = vld [vmem:[%s3691_s11 + $0xe8] sm:$0xff]  ;;  %v2221_v23 = vld [vmem:[%s3691_s11 + $0xf0] sm:$0xff]  ;;  %v868_v24 = vsel %vm864_vm1, %v3471_v41, %v3730_v5 }
 0x1de   : > { %2965 = vmatpush3.msra.mxu0 %v968_v9  ;;  %v583_v30 = vpop.permute.xlu1 %582  ;;  %v3174_v29 = vpack.i.bf16 %v2220_v10, %v2219_v11 }
 0x1df   : > { %2967 = vmatmul.mubr.msk.f32.vlgmr.msra.gmra.mrb[2].mxu0 %vm266_vm0, %v3576_v18  ;;  %3125 = vrot.lane.b32.xlu0 %v3124_v8, %s3272_s12  ;;  %v3164_v8 = vpack.i.bf16 %v2216_v7, %v2215_v0  ;;  %v885_v7 = vsel %vm881_vm2, %v868_v24, %v583_v30 }
 0x1e0   : > { %2976 = vmatprep.mubr.msk.f32.mxu0 %vm266_vm0, %v3523_v58  ;;  %3130 = vrot.lane.b32.xlu1 %v3129_v20, %s3272_s12 }
 0x1e1   : > { %v629_v35 = vpop.permute.xlu0 %628 }
 0x1e2   : > { %v631_v45 = vpop.permute.xlu1 %630 }
 0x1e3   : > { %3135 = vrot.lane.b32.xlu0 %v3134_v16, %s3272_s12  ;;  %v3169_v16 = vpack.i.bf16 %v2218_v13, %v2217_v36  ;;  %v902_v36 = vsel %vm898_vm3, %v885_v7, %v631_v45 }
 0x1e4   : > { %3140 = vrot.lane.b32.xlu1 %v3139_v37, %s3272_s12 }
 0x1e5   : > { %v677_v52 = vpop.permute.xlu0 %676 }
 0x1e6   : > { %v679_v32 = vpop.permute.xlu1 %678 }
 0x1e7   : > { %3145 = vrot.lane.b32.xlu0 %v3144_v39, %s3272_s12  ;;  %v3179_v39 = vpack.i.bf16 %v2222_v21, %v2221_v23 }
 0x1e8   : > { %3150 = vrot.lane.b32.xlu1 %v3149_v63, %s3272_s12  ;;  %v884_v63 = vsel %vm881_vm2, %v867_v50, %v581_v15  ;;  %v919_v15 = vsel %vm915_vm4, %v902_v36, %v679_v32 }
 0x1e9   : > { %v537_v61 = vpop.permute.xlu0 %536  ;;  %v901_v3 = vsel %vm898_vm3, %v884_v63, %v629_v35 }
 0x1ea   : > { %v539_v9 = vpop.permute.xlu1 %538  ;;  %v918_v0 = vsel %vm915_vm4, %v901_v3, %v677_v52  ;;  %v869_v11 = vsel %vm864_vm1, %v3378_v25, %v537_v61 }
 0x1eb   : > { %3155 = vrot.lane.b32.xlu0 %v3154_v1, %s3272_s12  ;;  %v870_v23 = vsel %vm864_vm1, %v3382_v27, %v539_v9 }
 0x1ec   : > { %3160 = vrot.lane.b32.xlu1 %v3159_v2, %s3272_s12 }
 0x1ed   : > { %v725_v20 = vpop.permute.xlu0 %724 }
 0x1ee   : > { %v727_v31 = vpop.permute.xlu1 %726  ;;  %v935_v2 = vsel %vm932_vm5, %v918_v0, %v725_v20 }
 0x1ef   : > { %3165 = vrot.lane.b32.xlu0 %v3164_v8, %s3272_s12  ;;  %v936_v13 = vsel %vm932_vm5, %v919_v15, %v727_v31 }
 0x1f0   : > { %3170 = vrot.lane.b32.xlu1 %v3169_v16, %s3272_s12 }
 0x1f1   : > { %v585_v37 = vpop.permute.xlu0 %584 }
 0x1f2   : > { %v587_v42 = vpop.permute.xlu1 %586  ;;  %v886_v20 = vsel %vm881_vm2, %v869_v11, %v585_v37  ;;  %v873_v11 = vsel %vm864_vm1, %v3370_v17, %v3479_v44  ;;  %v874_v17 = vsel %vm864_vm1, %v3385_v28, %v3487_v47 }
 0x1f3   : > { %3175 = vrot.lane.b32.xlu0 %v3174_v29, %s3272_s12  ;;  %v887_v31 = vsel %vm881_vm2, %v870_v23, %v587_v42 }
 0x1f4   : > { %3180 = vrot.lane.b32.xlu1 %v3179_v39, %s3272_s12 }
 0x1f5   : > { %v773_v22 = vpop.permute.xlu0 %772 }
 0x1f6   : > { %v775_v26 = vpop.permute.xlu1 %774  ;;  %v952_v40 = vsel %vm949_vm6, %v935_v2, %v773_v22 }
 0x1f7   : > { %v953_v41 = vsel %vm949_vm6, %v936_v13, %v775_v26 }
 0x1f9   : > { %v633_v1 = vpop.permute.xlu0 %632 }
 0x1fa   : > { %v635_v8 = vpop.permute.xlu1 %634  ;;  %v903_v29 = vsel %vm898_vm3, %v886_v20, %v633_v1  ;;  %v890_v20 = vsel %vm881_vm2, %v873_v11, %v3483_v46 }
 0x1fb   : > { %v904_v50 = vsel %vm898_vm3, %v887_v31, %v635_v8 }
 0x1fd   : > { %v821_v4 = vpop.permute.xlu0 %820 }
 0x1fe   : > { %v969_v35 = vsel %vm966_vm7, %v952_v40, %v821_v4  ;;  %v823_v5 = vpop.permute.xlu1 %822 }
 0x1ff   : > { %2969 = vmatprep.subr.mxu1 %v969_v35  ;;  %v970_v30 = vsel %vm966_vm7, %v953_v41, %v823_v5 }
 0x200   : > { %2970 = vmatpush3.msra.mxu1 %v969_v35  ;;  %2974 = vmatprep.subr.mxu0 %v970_v30 }
 0x201   : > { %v681_v52 = vpop.permute.xlu0 %680  ;;  %2972 = vmatmul.mubr.msk.f32.vlgmr.msra.gmra.mrb[2].mxu1 %vm266_vm0, %v3576_v18  ;;  %2975 = vmatpush3.msra.mxu0 %v970_v30 }
 0x202   : > { %2981 = vmatprep.mubr.msk.f32.mxu1 %vm266_vm0, %v3523_v58  ;;  %v683_v45 = vpop.permute.xlu1 %682  ;;  %2977 = vmatmul.mubr.msk.f32.vlgmr.msra.gmra.mrb[4].mxu0 %vm266_vm0, %v3576_v18  ;;  %v920_v21 = vsel %vm915_vm4, %v903_v29, %v681_v52 }
 0x203   : > { %2986 = vmatprep.mubr.msk.f32.mxu0 %vm266_vm0, %v3523_v58  ;;  %v921_v37 = vsel %vm915_vm4, %v904_v50, %v683_v45 }
 0x205   : > { %v729_v32 = vpop.permute.xlu0 %728 }
 0x206   : > { %v731_v10 = vpop.permute.xlu1 %730  ;;  %v937_v39 = vsel %vm932_vm5, %v920_v21, %v729_v32 }
 0x207   : > { %v938_v63 = vsel %vm932_vm5, %v921_v37, %v731_v10 }
 0x209   : > { %v777_v16 = vpop.permute.xlu0 %776 }
 0x20a   : > { %v779_v22 = vpop.permute.xlu1 %778  ;;  %v954_v25 = vsel %vm949_vm6, %v937_v39, %v777_v16 }
 0x20b   : > { %v955_v27 = vsel %vm949_vm6, %v938_v63, %v779_v22 }
 0x20d   : > { %v825_v61 = vpop.permute.xlu0 %824 }
 0x20e   : > { %v971_v26 = vsel %vm966_vm7, %v954_v25, %v825_v61  ;;  %v827_v9 = vpop.permute.xlu1 %826 }
 0x20f   : > { %2979 = vmatprep.subr.mxu1 %v971_v26  ;;  %v972_v42 = vsel %vm966_vm7, %v955_v27, %v827_v9 }
 0x210   : > { %2980 = vmatpush3.msra.mxu1 %v971_v26  ;;  %2984 = vmatprep.subr.mxu0 %v972_v42 }
 0x211   : > { %v3813_v1 = vpop.permute.xlu0 %556  ;;  %2982 = vmatmul.mubr.msk.f32.vlgmr.msra.gmra.mrb[4].mxu1 %vm266_vm0, %v3576_v18  ;;  %2985 = vmatpush3.msra.mxu0 %v972_v42 }
 0x212   : > { %2991 = vmatprep.mubr.msk.f32.mxu1 %vm266_vm0, %v3523_v58  ;;  %v3819_v3 = vpop.permute.xlu1 %558  ;;  %2987 = vmatmul.mubr.msk.f32.vlgmr.msra.gmra.mrb[6].mxu0 %vm266_vm0, %v3576_v18 }
 0x213   : > { %2996 = vmatprep.mubr.msk.f32.mxu0 %vm266_vm0, %v3523_v58 }
 0x215   : > { %v3823_v24 = vpop.permute.xlu0 %604 }
 0x216   : > { %v3827_v0 = vpop.permute.xlu1 %606 }
 0x219   : > { %v3829_v7 = vpop.permute.xlu0 %652 }
 0x21a   : > { %v3831_v2 = vpop.permute.xlu1 %654 }
 0x21d   : > { %v541_v8 = vpop.permute.xlu0 %540 }
 0x21e   : > { %v543_v36 = vpop.permute.xlu1 %542  ;;  %v871_v30 = vsel %vm864_vm1, %v3609_v33, %v541_v8  ;;  %v907_v33 = vsel %vm898_vm3, %v890_v20, %v3489_v48  ;;  %v891_v48 = vsel %vm881_vm2, %v874_v17, %v3493_v49 }
 0x21f   : > { %v872_v16 = vsel %vm864_vm1, %v3619_v38, %v543_v36  ;;  %v924_v44 = vsel %vm915_vm4, %v907_v33, %v3497_v51  ;;  %v908_v28 = vsel %vm898_vm3, %v891_v48, %v3505_v53 }
 0x220   : > { %v941_v22 = vsel %vm932_vm5, %v924_v44, %v3507_v54  ;;  %v925_v61 = vsel %vm915_vm4, %v908_v28, %v3512_v55 }
 0x221   : > { %v589_v40 = vpop.permute.xlu0 %588  ;;  %v958_v47 = vsel %vm949_vm6, %v941_v22, %v3514_v56  ;;  %v942_v26 = vsel %vm932_vm5, %v925_v61, %v3518_v57 }
 0x222   : > { %v591_v4 = vpop.permute.xlu1 %590  ;;  %v888_v45 = vsel %vm881_vm2, %v871_v30, %v589_v40  ;;  %v975_v54 = vsel %vm966_vm7, %v958_v47, %v3525_v59  ;;  %v959_v55 = vsel %vm949_vm6, %v942_v26, %v3534_v60  ;;  %v879_v60 = vsel %vm864_vm1, %v3567_v12, %v3813_v1 }
 0x223   : > { %v889_v23 = vsel %vm881_vm2, %v872_v16, %v591_v4  ;;  %v976_v63 = vsel %vm966_vm7, %v959_v55, %v3538_v62  ;;  %v896_v27 = vsel %vm881_vm2, %v879_v60, %v3823_v24  ;;  %v880_v12 = vsel %vm864_vm1, %v3581_v19, %v3819_v3 }
 0x224   : > { %v913_v9 = vsel %vm898_vm3, %v896_v27, %v3829_v7 }
 0x225   : > { %v637_v15 = vpop.permute.xlu0 %636 }
 0x226   : > { %v639_v35 = vpop.permute.xlu1 %638  ;;  %v905_v10 = vsel %vm898_vm3, %v888_v45, %v637_v15 }
 0x227   : > { %v906_v46 = vsel %vm898_vm3, %v889_v23, %v639_v35 }
 0x229   : > { %v685_v13 = vpop.permute.xlu0 %684 }
 0x22a   : > { %v687_v41 = vpop.permute.xlu1 %686  ;;  %v922_v29 = vsel %vm915_vm4, %v905_v10, %v685_v13 }
 0x22b   : > { %v923_v50 = vsel %vm915_vm4, %v906_v46, %v687_v41 }
 0x22d   : > { %v733_v5 = vpop.permute.xlu0 %732 }
 0x22e   : > { %v735_v52 = vpop.permute.xlu1 %734  ;;  %v939_v21 = vsel %vm932_vm5, %v922_v29, %v733_v5 }
 0x22f   : > { %v940_v51 = vsel %vm932_vm5, %v923_v50, %v735_v52 }
 0x231   : > { %v781_v32 = vpop.permute.xlu0 %780 }
 0x232   : > { %v783_v31 = vpop.permute.xlu1 %782  ;;  %v956_v38 = vsel %vm949_vm6, %v939_v21, %v781_v32 }
 0x233   : > { %v957_v49 = vsel %vm949_vm6, %v940_v51, %v783_v31 }
 0x235   : > { %v829_v39 = vpop.permute.xlu0 %828 }
 0x236   : > { %v973_v25 = vsel %vm966_vm7, %v956_v38, %v829_v39  ;;  %v831_v37 = vpop.permute.xlu1 %830 }
 0x237   : > { %2989 = vmatprep.subr.mxu1 %v973_v25  ;;  %v974_v53 = vsel %vm966_vm7, %v957_v49, %v831_v37 }
 0x238   : > { %2990 = vmatpush3.msra.mxu1 %v973_v25  ;;  %2994 = vmatprep.subr.mxu0 %v974_v53 }
 0x239   : > { %2992 = vmatmul.mubr.msk.f32.vlgmr.msra.gmra.mrb[6].mxu1 %vm266_vm0, %v3576_v18  ;;  %2999 = vmatprep.subr.mxu1 %v975_v54  ;;  %v701_v56 = vpop.permute.xlu0 %700 }
 0x23a   : > { %3000 = vmatpush3.msra.mxu1 %v975_v54  ;;  %2995 = vmatpush3.msra.mxu0 %v974_v53  ;;  %v703_v57 = vpop.permute.xlu1 %702  ;;  %v930_v42 = vsel %vm915_vm4, %v913_v9, %v701_v56 }
 0x23b   : > { %3009 = vmatprep.subr.mxu1 %v3659_v34  ;;  %2997 = vmatmul.mubr.msk.f32.vlgmr.msra.gmra.mrb[8].mxu0 %vm266_vm0, %v3576_v18 }
 0x23c   : > { %3004 = vmatprep.subr.mxu0 %v976_v63  ;;  %3001 = vmatprep.mubr.msk.f32.mxu1 %vm266_vm0, %v3523_v58 }
 0x23d   : > { %3005 = vmatpush3.msra.mxu0 %v976_v63  ;;  %v749_v59 = vpop.permute.xlu0 %748  ;;  %3002 = vmatmul.mubr.msk.f32.vlgmr.msra.gmra.mrb[8].mxu1 %vm266_vm0, %v3576_v18 }
 0x23e   : > { %3014 = vmatprep.subr.mxu0 %v3668_v6  ;;  %3010 = vmatpush3.msra.mxu1 %v3659_v34  ;;  %v751_v62 = vpop.permute.xlu1 %750  ;;  %v947_v1 = vsel %vm932_vm5, %v930_v42, %v749_v59 }
 0x23f   : > { %3006 = vmatprep.mubr.msk.f32.mxu0 %vm266_vm0, %v3523_v58  ;;  %3019 = vmatprep.subr.mxu1 %v3686_v14 }
 0x240   : > { %3007 = vmatmul.mubr.msk.f32.vlgmr.msra.gmra.mrb[10].mxu0 %vm266_vm0, %v3576_v18  ;;  %3011 = vmatprep.mubr.msk.f32.mxu1 %vm266_vm0, %v3523_v58 }
 0x241   : > { %3015 = vmatpush3.msra.mxu0 %v3668_v6  ;;  %v797_v34 = vpop.permute.xlu0 %796  ;;  %3012 = vmatmul.mubr.msk.f32.vlgmr.msra.gmra.mrb[10].mxu1 %vm266_vm0, %v3576_v18  ;;  %v897_v6 = vsel %vm881_vm2, %v880_v12, %v3827_v0 }
 0x242   : > { %3024 = vmatprep.subr.mxu0 %v3720_v43  ;;  %3020 = vmatpush3.msra.mxu1 %v3686_v14  ;;  %v799_v24 = vpop.permute.xlu1 %798  ;;  %v914_v19 = vsel %vm898_vm3, %v897_v6, %v3831_v2  ;;  %v964_v14 = vsel %vm949_vm6, %v947_v1, %v797_v34 }
 0x243   : > { %3016 = vmatprep.mubr.msk.f32.mxu0 %vm266_vm0, %v3523_v58  ;;  %3021 = vmatprep.mubr.msk.f32.mxu1 %vm266_vm0, %v3523_v58  ;;  %v931_v0 = vsel %vm915_vm4, %v914_v19, %v703_v57 }
 0x244   : > { %3017 = vmatmul.mubr.msk.f32.vlgmr.msra.gmra.mrb[12].mxu0 %vm266_vm0, %v3576_v18  ;;  %v948_v8 = vsel %vm932_vm5, %v931_v0, %v751_v62 }
 0x245   : > { %3025 = vmatpush3.msra.mxu0 %v3720_v43  ;;  %v845_v3 = vpop.permute.xlu0 %844  ;;  %3026 = vmatprep.mubr.msk.f32.mxu0 %vm266_vm0, %v3523_v58  ;;  %v965_v43 = vsel %vm949_vm6, %v948_v8, %v799_v24 }
 0x246   : > { %v981_v7 = vsel %vm966_vm7, %v964_v14, %v845_v3  ;;  %3022 = vmatmul.mubr.msk.f32.vlgmr.msra.gmra.mrb[12].mxu1 %vm266_vm0, %v3576_v18  ;;  %v847_v2 = vpop.permute.xlu1 %846 }
 0x247   : > { %3029 = vmatprep.subr.mxu1 %v981_v7  ;;  %3031 = vmatprep.mubr.msk.f32.mxu1 %vm266_vm0, %v3523_v58  ;;  %v982_v36 = vsel %vm966_vm7, %v965_v43, %v847_v2 }
 0x248   : > { %3027 = vmatmul.mubr.msk.f32.vlgmr.msra.gmra.mrb[14].mxu0 %vm266_vm0, %v3576_v18  ;;  %3030 = vmatpush3.msra.mxu1 %v981_v7 }
 0x249   : > { %3036 = vmatprep.mubr.msk.f32.mxu0 %vm266_vm0, %v3523_v58  ;;  %3034 = vmatprep.subr.mxu0 %v982_v36  ;;  %v3106_v40 = vpop.permute.xlu0 %3105 }
 0x24a   : > { %3032 = vmatmul.mubr.msk.f32.vlgmr.msra.gmra.mrb[14].mxu1 %vm266_vm0, %v3576_v18  ;;  %3035 = vmatpush3.msra.mxu0 %v982_v36  ;;  %v3108_v4 = vunpack.i.h.bf16 %v3106_v40  ;;  %v3107_v15 = vunpack.i.l.bf16 %v3106_v40 }
 0x24c   : > { %3037 = vmatmul.mubr.msk.f32.vlgmr.msra.gmra.mrb[16].mxu0 %vm266_vm0, %v3576_v18  ;;  %v3111_v18 = vpop.permute.xlu1 %3110 }
 0x24d   : > { %v3113_v45 = vunpack.i.h.bf16 %v3111_v18  ;;  %v3112_v32 = vunpack.i.l.bf16 %v3111_v18  ;;  %v3116_v21 = vpop.permute.xlu0 %3115 }
 0x24e   : > { %v3118_v31 = vunpack.i.h.bf16 %v3116_v21  ;;  %v3117_v44 = vunpack.i.l.bf16 %v3116_v21 }
 0x250   : > { %v3121_v17 = vpop.permute.xlu1 %3120 }
 0x251   : > { %v3123_v46 = vunpack.i.h.bf16 %v3121_v17  ;;  %v3122_v39 = vunpack.i.l.bf16 %v3121_v17  ;;  %v3126_v56 = vpop.permute.xlu0 %3125 }
 0x252   : > { %v3128_v55 = vunpack.i.h.bf16 %v3126_v56  ;;  %v3127_v57 = vunpack.i.l.bf16 %v3126_v56 }
 0x254   : > { %v3131_v63 = vpop.permute.xlu1 %3130 }
 0x255   : > { %v3133_v59 = vunpack.i.h.bf16 %v3131_v63  ;;  %v3132_v62 = vunpack.i.l.bf16 %v3131_v63  ;;  %v3136_v8 = vpop.permute.xlu0 %3135 }
 0x256   : > { %v3138_v40 = vunpack.i.h.bf16 %v3136_v8 }
 0x258   : > { %v3141_v43 = vpop.permute.xlu1 %3140 }
 0x259   : > { %v3146_v2 = vpop.permute.xlu0 %3145 }
 0x25c   : > { %v3151_v36 = vpop.permute.xlu1 %3150 }
 0x270   : > { %v2963_v35 = vpop.f32.mrb[0].mxu1 }
 0x271   : > { %v2353_v13 = vsel %vm2351_vm8, %v2963_v35, %v3108_v4  ;;  %v1057_v41 = vpop.f32.mrb[1].mxu1  ;;  %v3137_v4 = vunpack.i.l.bf16 %v3136_v8  ;;  %v3143_v35 = vunpack.i.h.bf16 %v3141_v43 }
 0x272   : > { %v2385_v58 = vsel %vm266_vm0, %v2353_v13, 0.0  ;;  %v2352_v5 = vsel %vm2351_vm8, %v1057_v41, %v3107_v15  ;;  %v3156_v15 = vpop.permute.xlu0 %3155  ;;  %v3142_v41 = vunpack.i.l.bf16 %v3141_v43 }
 0x273   : > { %v2384_v30 = vsel %vm266_vm0, %v2352_v5, 0.0 }
 0x274   : > { %v2811_v52 = vpack.c.bf16 %v2385_v58, %v2384_v30  ;;  %v3161_v30 = vpop.permute.xlu1 %3160 }
 0x276   : > { %2812 = vst [vmem:[%s3952_s21] sm:$0xff] %v2811_v52  }
 0x2b2   : > { %v2968_v11 = vpop.f32.mrb[2].mxu0 }
 0x2b3   : > { %v2355_v10 = vsel %vm2351_vm8, %v2968_v11, %v3113_v45  ;;  %v1132_v20 = vpop.f32.mrb[3].mxu0  ;;  %v3148_v45 = vunpack.i.h.bf16 %v3146_v2 }
 0x2b4   : > { %v2387_v16 = vsel %vm266_vm0, %v2355_v10, 0.0  ;;  %v2354_v29 = vsel %vm2351_vm8, %v1132_v20, %v3112_v32  ;;  %v3147_v10 = vunpack.i.l.bf16 %v3146_v2 }
 0x2b5   : > { %v2386_v33 = vsel %vm266_vm0, %v2354_v29, 0.0 }
 0x2b6   : > { %v2816_v23 = vpack.c.bf16 %v2387_v16, %v2386_v33  ;;  %v3153_v33 = vunpack.i.h.bf16 %v3151_v36 }
 0x2b8   : > { %2888 = vst [vmem:[%s3952_s21 + $0x8] sm:$0xff] %v2816_v23  }
 0x2d4   : > { %v2973_v38 = vpop.f32.mrb[2].mxu1 }
 0x2d5   : > { %v2357_v48 = vsel %vm2351_vm8, %v2973_v38, %v3118_v31  ;;  %v1207_v22 = vpop.f32.mrb[3].mxu1  ;;  %v2978_v28 = vpop.f32.mrb[4].mxu0  ;;  %v3152_v31 = vunpack.i.l.bf16 %v3151_v36 }
 0x2d6   : > { %v2389_v50 = vsel %vm266_vm0, %v2357_v48, 0.0  ;;  %v2356_v25 = vsel %vm2351_vm8, %v1207_v22, %v3117_v44  ;;  %v2359_v51 = vsel %vm2351_vm8, %v2978_v28, %v3123_v46  ;;  %v1282_v49 = vpop.f32.mrb[5].mxu0  ;;  %v3166_v44 = vpop.permute.xlu0 %3165  ;;  %v3158_v48 = vunpack.i.h.bf16 %v3156_v15 }
 0x2d7   : > { %v2388_v47 = vsel %vm266_vm0, %v2356_v25, 0.0  ;;  %v2391_v37 = vsel %vm266_vm0, %v2359_v51, 0.0  ;;  %v2358_v54 = vsel %vm2351_vm8, %v1282_v49, %v3122_v39  ;;  %v3171_v51 = vpop.permute.xlu1 %3170 }
 0x2d8   : > { %v2821_v61 = vpack.c.bf16 %v2389_v50, %v2388_v47  ;;  %v2390_v26 = vsel %vm266_vm0, %v2358_v54, 0.0  ;;  %v3157_v47 = vunpack.i.l.bf16 %v3156_v15  ;;  %v3163_v54 = vunpack.i.h.bf16 %v3161_v30 }
 0x2d9   : > { %v2826_v53 = vpack.c.bf16 %v2391_v37, %v2390_v26  ;;  %v3172_v8 = vunpack.i.l.bf16 %v3171_v51 }
 0x2da   : > { %2889 = vst [vmem:[%s3952_s21 + $0x10] sm:$0xff] %v2821_v61  }
 0x2db   : > { %2890 = vst [vmem:[%s3952_s21 + $0x18] sm:$0xff] %v2826_v53   ;;  %v3181_v2 = vpop.permute.xlu1 %3180 }
 0x2e4   : > { %v2983_v60 = vpop.f32.mrb[4].mxu1 }
 0x2e5   : > { %v2361_v27 = vsel %vm2351_vm8, %v2983_v60, %v3128_v55  ;;  %v1357_v34 = vpop.f32.mrb[5].mxu1  ;;  %v2988_v42 = vpop.f32.mrb[6].mxu0  ;;  %v3162_v55 = vunpack.i.l.bf16 %v3161_v30 }
 0x2e6   : > { %v2393_v9 = vsel %vm266_vm0, %v2361_v27, 0.0  ;;  %v2360_v12 = vsel %vm2351_vm8, %v1357_v34, %v3127_v57  ;;  %v2363_v1 = vsel %vm2351_vm8, %v2988_v42, %v3133_v59  ;;  %v1432_v19 = vpop.f32.mrb[7].mxu0  ;;  %v3167_v42 = vunpack.i.l.bf16 %v3166_v44 }
 0x2e7   : > { %v2392_v6 = vsel %vm266_vm0, %v2360_v12, 0.0  ;;  %v2395_v14 = vsel %vm266_vm0, %v2363_v1, 0.0  ;;  %v2362_v3 = vsel %vm2351_vm8, %v1432_v19, %v3132_v62  ;;  %v3168_v62 = vunpack.i.h.bf16 %v3166_v44 }
 0x2e8   : > { %v2831_v24 = vpack.c.bf16 %v2393_v9, %v2392_v6  ;;  %v2394_v0 = vsel %vm266_vm0, %v2362_v3, 0.0  ;;  %v3176_v6 = vpop.permute.xlu0 %3175 }
 0x2e9   : > { %v2836_v7 = vpack.c.bf16 %v2395_v14, %v2394_v0  ;;  %v3173_v14 = vunpack.i.h.bf16 %v3171_v51  ;;  %v3178_v15 = vunpack.i.h.bf16 %v3176_v6 }
 0x2ea   : > { %2891 = vst [vmem:[%s3952_s21 + $0x20] sm:$0xff] %v2831_v24  }
 0x2eb   : > { %2892 = vst [vmem:[%s3952_s21 + $0x28] sm:$0xff] %v2836_v7  }
 0x30c   : > { %v2993_v13 = vpop.f32.mrb[6].mxu1 }
 0x30d   : > { %v2365_v58 = vsel %vm2351_vm8, %v2993_v13, %v3138_v40  ;;  %v1507_v5 = vpop.f32.mrb[7].mxu1 }
 0x30e   : > { %v2397_v52 = vsel %vm266_vm0, %v2365_v58, 0.0  ;;  %v2364_v18 = vsel %vm2351_vm8, %v1507_v5, %v3137_v4  ;;  %v2998_v32 = vpop.f32.mrb[8].mxu0  ;;  %v3177_v5 = vunpack.i.l.bf16 %v3176_v6 }
 0x30f   : > { %v2396_v11 = vsel %vm266_vm0, %v2364_v18, 0.0  ;;  %v2367_v20 = vsel %vm2351_vm8, %v2998_v32, %v3143_v35  ;;  %v1582_v29 = vpop.f32.mrb[9].mxu0 }
 0x310   : > { %v2841_v16 = vpack.c.bf16 %v2397_v52, %v2396_v11  ;;  %v2399_v23 = vsel %vm266_vm0, %v2367_v20, 0.0  ;;  %v2366_v21 = vsel %vm2351_vm8, %v1582_v29, %v3142_v41  ;;  %v3003_v17 = vpop.f32.mrb[8].mxu1  ;;  %v3182_v20 = vunpack.i.l.bf16 %v3181_v2 }
 0x311   : > { %v2398_v46 = vsel %vm266_vm0, %v2366_v21, 0.0  ;;  %v2369_v38 = vsel %vm2351_vm8, %v3003_v17, %v3148_v45  ;;  %v1657_v39 = vpop.f32.mrb[9].mxu1  ;;  %v3183_v45 = vunpack.i.h.bf16 %v3181_v2 }
 0x312   : > { %2893 = vst [vmem:[%s3952_s21 + $0x30] sm:$0xff] %v2841_v16   ;;  %v2846_v22 = vpack.c.bf16 %v2399_v23, %v2398_v46  ;;  %v2401_v50 = vsel %vm266_vm0, %v2369_v38, 0.0  ;;  %v2368_v28 = vsel %vm2351_vm8, %v1657_v39, %v3147_v10 }
 0x313   : > { %v3008_v25 = vpop.f32.mrb[10].mxu0  ;;  %v2400_v49 = vsel %vm266_vm0, %v2368_v28, 0.0 }
 0x314   : > { %v2371_v61 = vsel %vm2351_vm8, %v3008_v25, %v3153_v33  ;;  %v1732_v37 = vpop.f32.mrb[11].mxu0  ;;  %2894 = vst [vmem:[%s3952_s21 + $0x38] sm:$0xff] %v2846_v22   ;;  %v2851_v53 = vpack.c.bf16 %v2401_v50, %v2400_v49  ;;  %v3013_v63 = vpop.f32.mrb[10].mxu1 }
 0x315   : > { %v2403_v26 = vsel %vm266_vm0, %v2371_v61, 0.0  ;;  %v2370_v56 = vsel %vm2351_vm8, %v1732_v37, %v3152_v31  ;;  %v2373_v59 = vsel %vm2351_vm8, %v3013_v63, %v3158_v48  ;;  %v1807_v60 = vpop.f32.mrb[11].mxu1 }
 0x316   : > { %v2402_v57 = vsel %vm266_vm0, %v2370_v56, 0.0  ;;  %2895 = vst [vmem:[%s3952_s21 + $0x40] sm:$0xff] %v2851_v53   ;;  %v2405_v34 = vsel %vm266_vm0, %v2373_v59, 0.0  ;;  %v2372_v12 = vsel %vm2351_vm8, %v1807_v60, %v3157_v47 }
 0x317   : > { %v2856_v27 = vpack.c.bf16 %v2403_v26, %v2402_v57  ;;  %v3018_v9 = vpop.f32.mrb[12].mxu0  ;;  %v2404_v24 = vsel %vm266_vm0, %v2372_v12, 0.0 }
 0x318   : > { %v2375_v1 = vsel %vm2351_vm8, %v3018_v9, %v3163_v54  ;;  %v1882_v19 = vpop.f32.mrb[13].mxu0  ;;  %v2861_v0 = vpack.c.bf16 %v2405_v34, %v2404_v24 }
 0x319   : > { %2896 = vst [vmem:[%s3952_s21 + $0x48] sm:$0xff] %v2856_v27   ;;  %v2407_v3 = vsel %vm266_vm0, %v2375_v1, 0.0  ;;  %v2374_v7 = vsel %vm2351_vm8, %v1882_v19, %v3162_v55  ;;  %v3023_v43 = vpop.f32.mrb[12].mxu1 }
 0x31a   : > { %v2406_v36 = vsel %vm266_vm0, %v2374_v7, 0.0  ;;  %v2377_v40 = vsel %vm2351_vm8, %v3023_v43, %v3168_v62  ;;  %v1957_v4 = vpop.f32.mrb[13].mxu1  ;;  %2897 = vst [vmem:[%s3952_s21 + $0x50] sm:$0xff] %v2861_v0  }
 0x31b   : > { %v2866_v35 = vpack.c.bf16 %v2407_v3, %v2406_v36  ;;  %v2409_v13 = vsel %vm266_vm0, %v2377_v40, 0.0  ;;  %v3028_v41 = vpop.f32.mrb[14].mxu0  ;;  %v2376_v58 = vsel %vm2351_vm8, %v1957_v4, %v3167_v42 }
 0x31c   : > { %v2379_v30 = vsel %vm2351_vm8, %v3028_v41, %v3173_v14  ;;  %v2408_v52 = vsel %vm266_vm0, %v2376_v58, 0.0  ;;  %v2032_v18 = vpop.f32.mrb[15].mxu0 }
 0x31d   : > { %2898 = vst [vmem:[%s3952_s21 + $0x58] sm:$0xff] %v2866_v35   ;;  %v2411_v32 = vsel %vm266_vm0, %v2379_v30, 0.0  ;;  %v2871_v11 = vpack.c.bf16 %v2409_v13, %v2408_v52  ;;  %v2378_v10 = vsel %vm2351_vm8, %v2032_v18, %v3172_v8  ;;  %v3033_v16 = vpop.f32.mrb[14].mxu1 }
 0x31e   : > { %v2410_v29 = vsel %vm266_vm0, %v2378_v10, 0.0  ;;  %v2381_v33 = vsel %vm2351_vm8, %v3033_v16, %v3178_v15  ;;  %v2107_v23 = vpop.f32.mrb[15].mxu1 }
 0x31f   : > { %2899 = vst [vmem:[%s3952_s21 + $0x60] sm:$0xff] %v2871_v11   ;;  %v2876_v21 = vpack.c.bf16 %v2411_v32, %v2410_v29  ;;  %v2413_v31 = vsel %vm266_vm0, %v2381_v33, 0.0  ;;  %v3038_v17 = vpop.f32.mrb[16].mxu0  ;;  %v2380_v44 = vsel %vm2351_vm8, %v2107_v23, %v3177_v5 }
 0x320   : > { %v2383_v46 = vsel %vm2351_vm8, %v3038_v17, %v3183_v45  ;;  %v2412_v38 = vsel %vm266_vm0, %v2380_v44, 0.0  ;;  %v2182_v39 = vpop.f32.mrb[17].mxu0 }
 0x321   : > { %2900 = vst [vmem:[%s3952_s21 + $0x68] sm:$0xff] %v2876_v21   ;;  %v2415_v48 = vsel %vm266_vm0, %v2383_v46, 0.0  ;;  %v2881_v22 = vpack.c.bf16 %v2413_v31, %v2412_v38  ;;  %v2382_v50 = vsel %vm2351_vm8, %v2182_v39, %v3182_v20 }
 0x322   : > { %v2414_v25 = vsel %vm266_vm0, %v2382_v50, 0.0 }
 0x323   : > { %2901 = vst [vmem:[%s3952_s21 + $0x70] sm:$0xff] %v2881_v22   ;;  %v2886_v28 = vpack.c.bf16 %v2415_v48, %v2414_v25 }
 0x325   : > { %2902 = vst [vmem:[%s3952_s21 + $0x78] sm:$0xff] %v2886_v28  }
 0x326   : > { %3197 = shalt.err (!%p3194_p6)
}
 0x327   : > { %s3198_s9 = scalar_lea.hbm %s4033_s30, 2048  ;;  %s3202_s13 = scalar_lea.hbm %s4092_s4, 4096 }
 0x328   : > { %p3199_p7 = scmp.ne.s32.totalorder %s4033_s30, %s3198_s9  ;;  %p3203_p11 = scmp.lt.u32.totalorder %s4033_s30, %s4092_s4 }
 0x329   : > { %p3204_p12 = scmp.lt.u32.totalorder %s3202_s13, %s3198_s9  ;;  %p3206_p0 = scmp.lt.u32.totalorder %s3198_s9, %s4033_s30 }
 0x32a   : > { %p3200_p9 = pnand %p3199_p7, %p3340_p4 }
 0x32b   : > { %p3205_p13 = por %p3204_p12, %p3203_p11 }
 0x32c   : > { %p3201_p10 = pneg %p3200_p9 }
 0x32d   : > { %p3207_p1 = por %p3206_p0, %p3205_p13 }
 0x32f   : > { %p3208_p2 = pnand %p3207_p1, %p3201_p10 }
 0x331   : > { %3211 = shalt.err (!%p3208_p2)
}
 0x332   : > { %s3274_s22 = smov 64  }
 0x333   : > { %3039 = dma.vmem_to_hbm [thread:$0]  (%p3340_p4), %s4036_s24, 2048, %s4033_s30, %s4041_s18, %s3274_s22, %s3274_s22, %s3272_s12  }
 0x334 PF: > { %p3045_p3 = scmp.ge.s32.totalorder %s3262_s20, 2  ;;  %s2607_s26 = sand.u32 1, %s3242_s15  }
 0x335   : > { %s2608_s29 = scalar_lea.sflag [#allocation3], %s2607_s26 }
 0x336   : > { %p3042_p5 = pnand %p3045_p3, %p3347_p8 }
 0x338   : > { %3237 = dma.done.wait (!%p3042_p5), %s2608_s29, 2048  }
 0x339   : > { %3239 = vsyncadd (!%p3042_p5), %s2608_s29, 4294965248  ;;  %s17_s20 = sadd.s32 1, %s3262_s20   ;;  %s4095_s15 = smov %s3246_s16 }
 0x33a   : > { %p14_p6 = scmp.ge.s32.totalorder %s17_s20, 4   ;;  %s4096_s16 = smov %s3250_s17 }
 0x33b   : > { %s4097_s17 = smov %s3353_s28  ;;  %s4098_s18 = smov %s3258_s19 }
 0x33c   : > { %s4099_s19 = smov %s4101_s23  ;;  %16 = sbr.rel (!%p14_p6) target bundleno = 4 (0x4), region = 77 }
 0x343   :  { %2613 = vsyncpa [#allocation3], 1 }
 0x344   :  { %2615 = vsyncpa [#allocation3 + $0x1], 1 }

</bundles_post_ra>
